<compile_context>
chip_gen: v5e
topology: v5e:2x2
jax: 0.10.0
libtpu: 0.0.40
codegen_flags: <defaults>
</compile_context>

<pallas_src>
import functools
import numpy as np
import jax
import jax.numpy as jnp
from jax.experimental import pallas as pl
from jax.experimental.pallas import tpu as pltpu

# ------------------------- config (scaled down) -------------------------
GRID = 16            # BEV is GRID x GRID (reference: 500 x 500)
MAX_PILLARS = 64     # reference: 12000
MAX_PTS = 8          # reference: 100
N_CLASSES = 3
N_BOXES = 2
EPS = 1e-5
PFN_K = 10
PFN_K_PAD = 16       # MXU/lane-friendlier K for the PFN 1x1 conv
PFN_C = 64
HEAD_PAD = 128       # lane-dense head channels: 8 loc + 6 cls + zero padding
PFN_TILE = 64        # pillars per PFN grid step


# ------------------------------ Pallas kernels ------------------------------
def _conv_row_kernel(*args, kw, stride, wo, relu, has_res, has_proj, n_phase):
    """One grid step = (batch b, output row r, kernel-row tap t).

    refs (in order): x phase refs (n_phase) each (W_phase, Cin) bf16,
                     w (kh*kw, Cin, Cout) bf16 (resident, BN scale folded in),
                     shift (1, Cout) f32,
                     [res_in (Wo, Cin_res), wd (Cin_res, Cout), dshift (1, Cout)]  or
                     [res (Wo, Cout)],
                     out (Wo, Cout), acc scratch (Wo, Cout) f32.
    """
    i = 0
    phase_refs = args[i:i + n_phase]; i += n_phase
    w_ref = args[i]; i += 1
    shift_ref = args[i]; i += 1
    resin_ref = wd_ref = dshift_ref = res_ref = None
    if has_proj:
        resin_ref, wd_ref, dshift_ref = args[i:i + 3]; i += 3
    elif has_res:
        res_ref = args[i]; i += 1
    o_ref = args[i]
    acc_ref = args[i + 1]

    t = pl.program_id(2)

    @pl.when(t == 0)
    def _init():
        acc_ref[...] = jnp.zeros_like(acc_ref)

    # kw column taps of kernel row t.  The wrapper's even/odd phase split makes every
    # slice contiguous even for stride-2 convolutions.
    for dj in range(kw):
        xs = phase_refs[dj % stride][pl.ds(dj // stride, wo), :]      # (Wo, Cin) bf16
        wk = w_ref[t * kw + dj]                                       # (Cin, Cout) bf16
        acc_ref[...] += jnp.dot(xs, wk, preferred_element_type=jnp.float32)

    @pl.when(t == pl.num_programs(2) - 1)
    def _finalize():
        y = acc_ref[...] + shift_ref[...]
        if has_proj:   # fused 1x1 stride-s downsample projection of the residual path
            y = y + jnp.dot(resin_ref[...], wd_ref[...],
                            preferred_element_type=jnp.float32) + dshift_ref[...]
        elif has_res:
            y = y + res_ref[...].astype(jnp.float32)
        if relu:
            y = jnp.maximum(y, 0.0)
        o_ref[...] = y.astype(o_ref.dtype)


def _pfn_kernel(x_ref, w_ref, shift_ref, o_ref):
    # x: (TP, Npts, K), w: (K, 64) (BN scale folded), shift: (1, 1, 64)
    tp, npts, k = x_ref.shape
    y = jnp.dot(x_ref[...].reshape(tp * npts, k), w_ref[...],
                preferred_element_type=jnp.float32)
    y = y.reshape(tp, npts, -1) + shift_ref[...]
    o_ref[...] = jnp.max(jnp.maximum(y, 0.0), axis=1)      # max over points per pillar


# ------------------------------ Pallas wrappers ------------------------------
def conv3x3(x, w_folded, shift, *, stride=1, relu=True, residual=None,
            res_proj=None, out_dtype=jnp.bfloat16):
    """3x3 conv, padding=1, NHWC, BN folded (scale in weights, shift passed).

    x:         (B, H, W, Cin)
    w_folded:  (9, Cin, Cout)  bf16
    shift:     (1, Cout)       f32
    residual:  (B, Ho, Wo, Cout) added before the final ReLU, or
    res_proj:  (x_sub (B,Ho,Wo,Cr), wd (Cr,Cout) bf16, dshift (1,Cout)) -- fused
               1x1 stride-s projection residual (BN folded into wd).
    """
    kh = kw = 3
    B, H, W, Cin = x.shape
    Cout = w_folded.shape[-1]
    Ho = (H + 2 - kh) // stride + 1
    Wo = (W + 2 - kw) // stride + 1

    x = x.astype(jnp.bfloat16)
    xpad = jnp.pad(x, ((0, 0), (1, 1), (1, 1), (0, 0)))
    if stride == 1:
        phases = [xpad]
    else:  # even/odd column phases -> contiguous in-kernel tap slices for stride 2
        phases = [xpad[:, :, 0::2, :], xpad[:, :, 1::2, :]]

    x_map = lambda b, r, t: (b, r * stride + t, 0, 0)
    const3 = lambda b, r, t: (0, 0, 0)
    const2 = lambda b, r, t: (0, 0)
    row_map = lambda b, r, t: (b, r, 0, 0)

    in_arrays = list(phases) + [w_folded, shift]
    in_specs = [pl.BlockSpec((None, None, ph.shape[2], Cin), x_map) for ph in phases]
    in_specs += [pl.BlockSpec(w_folded.shape, const3),     # resident across the grid
                 pl.BlockSpec(shift.shape, const2)]

    has_proj = res_proj is not None
    has_res = residual is not None
    if has_proj:
        x_sub, wd, dshift = res_proj
        x_sub = x_sub.astype(jnp.bfloat16)
        in_arrays += [x_sub, wd, dshift]
        in_specs += [pl.BlockSpec((None, None, Wo, x_sub.shape[-1]), row_map),
                     pl.BlockSpec(wd.shape, const2),
                     pl.BlockSpec(dshift.shape, const2)]
    elif has_res:
        in_arrays.append(residual)
        in_specs.append(pl.BlockSpec((None, None, Wo, Cout), row_map))

    kernel = functools.partial(
        _conv_row_kernel, kw=kw, stride=stride, wo=Wo, relu=relu,
        has_res=has_res, has_proj=has_proj, n_phase=len(phases))

    return pl.pallas_call(
        kernel,
        grid=(B, Ho, kh),                      # tap axis = reduction (innermost)
        in_specs=in_specs,
        out_specs=pl.BlockSpec((None, None, Wo, Cout), row_map),
        out_shape=jax.ShapeDtypeStruct((B, Ho, Wo, Cout), out_dtype),
        scratch_shapes=[pltpu.VMEM((Wo, Cout), jnp.float32)],
        compiler_params=pltpu.CompilerParams(
            dimension_semantics=("parallel", "parallel", "arbitrary")),
    )(*in_arrays)


def pfn_encode(x, w, shift, *, tile=PFN_TILE):
    """x: (P, MAX_PTS, PFN_K_PAD) f32 -> (P, 64) f32."""
    P = x.shape[0]
    Pp = ((P + tile - 1) // tile) * tile
    if Pp != P:
        x = jnp.pad(x, ((0, Pp - P), (0, 0), (0, 0)))
    cout = w.shape[-1]
    out = pl.pallas_call(
        _pfn_kernel,
        grid=(Pp // tile,),
        in_specs=[pl.BlockSpec((tile, x.shape[1], x.shape[2]), lambda i: (i, 0, 0)),
                  pl.BlockSpec(w.shape, lambda i: (0, 0)),
                  pl.BlockSpec(shift.shape, lambda i: (0, 0, 0))],
        out_specs=pl.BlockSpec((tile, cout), lambda i: (i, 0)),
        out_shape=jax.ShapeDtypeStruct((Pp, cout), jnp.float32),
        compiler_params=pltpu.CompilerParams(dimension_semantics=("parallel",)),
    )(x, w, shift)
    return out[:P]


# ------------------------------ host-side pillarization (numpy glue) ----------
# Mirrors PFNv2.augment_points / make_input_tensor (numba/scipy replaced by numpy).
def augment_points_np(pts, grid, max_pillars):
    pts = np.asarray(pts, dtype=np.float64)
    mask = (pts[:, 0] > -40) & (pts[:, 0] < 40) & (pts[:, 2] > 0) & (pts[:, 2] < 70.4)
    pts = pts[mask]
    n = pts.shape[0]
    new = np.zeros((n, 10), dtype=np.float64)
    new[:, :5] = pts
    xedges = np.linspace(-40, 40, grid + 1)
    zedges = np.linspace(80, 0, grid + 1)
    x, y, z = pts[:, 0], pts[:, 1], pts[:, 2]
    x_inds = np.clip(np.digitize(x, xedges) - 1, 0, grid - 1)
    z_inds = np.clip(np.digitize(z, zedges) - 1, 0, grid - 1)
    bin_idxs = np.stack([z_inds, x_inds], axis=1).astype(np.int64)
    sums = np.zeros((3, grid, grid))
    counts = np.zeros((grid, grid))
    np.add.at(counts, (z_inds, x_inds), 1.0)
    for k, arr in enumerate((x, y, z)):
        np.add.at(sums[k], (z_inds, x_inds), arr)
    means = sums / np.maximum(counts, 1.0)[None]
    cell = 80.0 / grid
    x_ctr = np.tile(np.linspace(-40 + cell / 2, 40 - cell / 2, grid), (grid, 1))
    z_ctr = np.tile(np.linspace(80 - cell / 2, cell / 2, grid).reshape(-1, 1), (1, grid))
    new[:, 5] = x - means[0][z_inds, x_inds]
    new[:, 6] = y - means[1][z_inds, x_inds]
    new[:, 7] = z - means[2][z_inds, x_inds]
    new[:, 8] = x - x_ctr[z_inds, x_inds]
    new[:, 9] = z - z_ctr[z_inds, x_inds]
    pillar_idxs = np.unique(bin_idxs, axis=0)
    if pillar_idxs.shape[0] > max_pillars:
        rng = np.random.RandomState(0)
        rng.shuffle(pillar_idxs)
        pillar_idxs = pillar_idxs[:max_pillars]
    return new, bin_idxs, pillar_idxs


def make_input_tensor_np(new, bin_idxs, pillar_idxs, max_pillars, max_pts):
    out = np.zeros((max_pillars, max_pts, 10), dtype=np.float32)
    for i in range(pillar_idxs.shape[0]):
        cond = (bin_idxs[:, 0] == pillar_idxs[i, 0]) & (bin_idxs[:, 1] == pillar_idxs[i, 1])
        points = new[cond][:max_pts]
        out[i, :points.shape[0], :] = points
    return out


# ------------------------------ parameters ------------------------------
def init_params(key, n_classes):
    keys = iter(jax.random.split(key, 96))

    def nk():
        return next(keys)

    def conv_w(cout, cin, k):
        fan = cin * k * k
        return (jax.random.normal(nk(), (cout, cin, k, k), jnp.float32)
                * np.sqrt(2.0 / fan)).astype(jnp.float32)

    def bn(c):
        gamma = 1.0 + 0.1 * jax.random.normal(nk(), (c,), jnp.float32)
        beta = 0.1 * jax.random.normal(nk(), (c,), jnp.float32)
        scale = gamma / np.sqrt(1.0 + EPS)   # running_mean=0, running_var=1 at init
        return scale.astype(jnp.float32), beta.astype(jnp.float32)

    p = {}
    w = conv_w(64, 10, 1)
    p['pfn_w'] = jnp.transpose(w[:, :, 0, 0])          # (10, 64)
    p['pfn_scale'], p['pfn_shift'] = bn(64)
    p['down_w'] = conv_w(64, 64, 3)
    p['down_s'], p['down_b'] = bn(64)

    def basic_block(cin, cout, stride):
        d = {'stride': stride, 'w1': conv_w(cout, cin, 3)}
        d['s1'], d['b1'] = bn(cout)
        d['w2'] = conv_w(cout, cout, 3)
        d['s2'], d['b2'] = bn(cout)
        if stride != 1 or cin != cout:
            d['wd'] = conv_w(cout, cin, 1)
            d['sd'], d['bd'] = bn(cout)
        return d

    def layer(cin, cout, stride):
        return [basic_block(cin, cout, stride), basic_block(cout, cout, 1)]

    p['block0'] = layer(64, 64, 1)
    p['block1'] = layer(64, 128, 2)
    p['block2'] = layer(128, 256, 2)
    p['block3'] = layer(256, 512, 2)

    def head(cin, cout):
        return {'w': conv_w(cout, cin, 3),
                'b': 0.1 * jax.random.normal(nk(), (cout,), jnp.float32)}

    # only block2 / block3 heads contribute to the returned (locs, scores)
    p['loc2'] = head(256, N_BOXES * 4)
    p['loc3'] = head(512, N_BOXES * 4)
    p['cl2'] = head(256, N_BOXES * n_classes)
    p['cl3'] = head(512, N_BOXES * n_classes)
    return p


# -------------------- inference-time parameter folding (host) --------------------
def _fold3(w_oihw, scale):
    """(Cout,Cin,3,3) * scale[o] -> (9, Cin, Cout) bf16, tap order (kh, kw)."""
    cout, cin = w_oihw.shape[0], w_oihw.shape[1]
    wf = w_oihw * scale[:, None, None, None]
    return jnp.transpose(wf, (2, 3, 1, 0)).reshape(9, cin, cout).astype(jnp.bfloat16)


def _fold1(w_oi11, scale):
    return (w_oi11[:, :, 0, 0] * scale[:, None]).T.astype(jnp.bfloat16)   # (Cin, Cout)


def _shift(b):
    return b.reshape(1, -1).astype(jnp.float32)


def prepare_params(p):
    q = {}
    # PFN: fold BN scale into the 1x1 weight, pad K 10 -> 16
    w = p['pfn_w'] * p['pfn_scale'][None, :]
    q['pfn_w'] = jnp.pad(w, ((0, PFN_K_PAD - PFN_K), (0, 0))).astype(jnp.float32)
    q['pfn_shift'] = p['pfn_shift'].reshape(1, 1, PFN_C).astype(jnp.float32)
    q['down'] = (_fold3(p['down_w'], p['down_s']), _shift(p['down_b']))

    def prep_block(d):
        out = {'stride': d['stride'],
               'w1': _fold3(d['w1'], d['s1']), 'b1': _shift(d['b1']),
               'w2': _fold3(d['w2'], d['s2']), 'b2': _shift(d['b2'])}
        if 'wd' in d:
            out['wd'] = _fold1(d['wd'], d['sd'])
            out['bd'] = _shift(d['bd'])
        return out

    for name in ('block0', 'block1', 'block2', 'block3'):
        q[name] = [prep_block(d) for d in p[name]]

    # lane-dense fused heads: [loc (8) | cls (6) | zeros] -> 128 output channels
    def prep_head(loc, cl):
        wcat = jnp.concatenate([loc['w'], cl['w']], axis=0)
        bcat = jnp.concatenate([loc['b'], cl['b']], axis=0)
        pad = HEAD_PAD - wcat.shape[0]
        wcat = jnp.pad(wcat, ((0, pad), (0, 0), (0, 0), (0, 0)))
        bcat = jnp.pad(bcat, (0, pad))
        return _fold3(wcat, jnp.ones((HEAD_PAD,), jnp.float32)), _shift(bcat)

    q['head2'] = prep_head(p['loc2'], p['cl2'])
    q['head3'] = prep_head(p['loc3'], p['cl3'])
    return q


# ------------------------------ forward ------------------------------
def basic_block_forward(x, p):
    s = p['stride']
    out = conv3x3(x, p['w1'], p['b1'], stride=s, relu=True)
    if 'wd' in p:
        # fused: relu( bn2(conv2(out)) + bn_d(conv1x1_s(x)) ), projection in-kernel
        x_sub = x[:, ::s, ::s, :]
        return conv3x3(out, p['w2'], p['b2'], stride=1, relu=True,
                       res_proj=(x_sub, p['wd'], p['bd']))
    # fused: relu( bn2(conv2(out)) + x )
    return conv3x3(out, p['w2'], p['b2'], stride=1, relu=True, residual=x)


def run_layer(x, blocks):
    for bp in blocks:
        x = basic_block_forward(x, bp)
    return x


def head_forward(x, head):
    wf, bf = head
    y = conv3x3(x, wf, bf, stride=1, relu=False, out_dtype=jnp.float32)
    B, Ho, Wo, _ = y.shape
    n_loc = N_BOXES * 4
    n_cl = N_BOXES * N_CLASSES
    loc = y[..., :n_loc].reshape(B, Ho * Wo * N_BOXES, 4)
    cls = y[..., n_loc:n_loc + n_cl].reshape(B, Ho * Wo * N_BOXES, N_CLASSES)
    return loc, cls


def ssd_forward(params, lidar_list):
    q = prepare_params(params)
    batch_size = len(lidar_list)
    pillar_inputs = np.zeros((batch_size, MAX_PILLARS, MAX_PTS, PFN_K_PAD), np.float32)
    flat_pos, src_rows = [], []
    for i, l in enumerate(lidar_list):
        new, bins, pidx = augment_points_np(np.asarray(l), GRID, MAX_PILLARS)
        pillar_inputs[i, :, :, :PFN_K] = make_input_tensor_np(
            new, bins, pidx, MAX_PILLARS, MAX_PTS)
        n = pidx.shape[0]
        flat_pos.append(i * GRID * GRID + pidx[:, 0] * GRID + pidx[:, 1])
        src_rows.append(i * MAX_PILLARS + np.arange(n))
    flat_pos = np.concatenate(flat_pos).astype(np.int32)
    src_rows = np.concatenate(src_rows).astype(np.int32)

    # PFN: 1x1 conv + folded-BN + ReLU + max over points (tiled Pallas kernel)
    x = jnp.asarray(pillar_inputs).reshape(batch_size * MAX_PILLARS, MAX_PTS, PFN_K_PAD)
    enc = pfn_encode(x, q['pfn_w'], q['pfn_shift'])               # (B*P, 64) f32

    # TODO(synk): the data-dependent pillar->BEV scatter stays as one batched XLA
    # gather+scatter (index count is data-dependent); a PrefetchScalarGridSpec-driven
    # Pallas scatter with input_output_aliases is possible but riskier.
    bev_flat = jnp.zeros((batch_size * GRID * GRID, PFN_C), jnp.float32)
    bev_flat = bev_flat.at[jnp.asarray(flat_pos)].set(enc[jnp.asarray(src_rows)])
    bev = bev_flat.reshape(batch_size, GRID, GRID, PFN_C)
    encoded_bev = jnp.transpose(bev, (0, 3, 1, 2))                # NCHW like reference

    # downsize + backbone (bf16 activations, f32 accumulate/epilogue inside kernels)
    h = conv3x3(bev.astype(jnp.bfloat16), q['down'][0], q['down'][1],
                stride=2, relu=True)
    b0 = run_layer(h, q['block0'])
    b1 = run_layer(b0, q['block1'])
    b2 = run_layer(b1, q['block2'])
    b3 = run_layer(b2, q['block3'])

    # prediction heads (block0/block1 heads are computed but unused in the reference)
    l2, c2 = head_forward(b2, q['head2'])
    l3, c3 = head_forward(b3, q['head3'])
    locs = jnp.concatenate([l2, l3], axis=1)
    classes_scores = jnp.concatenate([c2, c3], axis=1)
    return locs, classes_scores, encoded_bev


# ------------------------------ main ------------------------------
if __name__ == "__main__":
    key = jax.random.PRNGKey(0)
    kp, kl = jax.random.split(key)
    params = init_params(kp, N_CLASSES)

    # two synthetic point clouds, (200, 5) each: (x, y, z, reflectance, class)
    lidar = []
    for k in jax.random.split(kl, 2):
        ka, kb, kc, kd, ke = jax.random.split(k, 5)
        n = 200
        px = jax.random.uniform(ka, (n,), minval=-39.0, maxval=39.0)
        py = jax.random.uniform(kb, (n,), minval=-3.0, maxval=3.0)
        pz = jax.random.uniform(kc, (n,), minval=1.0, maxval=69.0)
        pr = jax.random.uniform(kd, (n,))
        pc = jax.random.randint(ke, (n,), 0, N_CLASSES).astype(jnp.float32)
        lidar.append(np.asarray(jnp.stack([px, py, pz, pr, pc], axis=1)))

    locs, classes_scores, encoded_bev = ssd_forward(params, lidar)
    jax.block_until_ready((locs, classes_scores, encoded_bev))
    assert locs.shape == (2, 2 * 2 * N_BOXES + 1 * 1 * N_BOXES, 4)
    assert classes_scores.shape == (2, 2 * 2 * N_BOXES + 1 * 1 * N_BOXES, N_CLASSES)
    assert encoded_bev.shape == (2, 64, GRID, GRID)
    print("KERNEL_OK")
</pallas_src>

<mosaic_0001>
module attributes {stable_mosaic.version = 11 : i64} {
  func.func @_pfn_kernel(%arg0: i32, %arg1: memref<64x8x16xf32, #tpu.memory_space<vmem>>, %arg2: memref<16x64xf32, #tpu.memory_space<vmem>>, %arg3: memref<1x1x64xf32, #tpu.memory_space<vmem>>, %arg4: memref<64x64xf32, #tpu.memory_space<vmem>>) attributes {dimension_semantics = [#tpu.dimension_semantics<parallel>], iteration_bounds = array<i64: 2>, scalar_prefetch = 0 : i64, scratch_operands = 0 : i64, tpu.core_type = #tpu.core_type<tc>, window_params = [{transform_indices = @transform_0, window_bounds = array<i64: 64, 8, 16>}, {pipeline_mode = #tpu.pipeline_mode<synchronous>, transform_indices = @transform_1, window_bounds = array<i64: 16, 64>}, {pipeline_mode = #tpu.pipeline_mode<synchronous>, transform_indices = @transform_2, window_bounds = array<i64: 1, 1, 64>}, {transform_indices = @transform_3, window_bounds = array<i64: 64, 64>}]} {
    %c0 = arith.constant 0 : index
    %c0_0 = arith.constant 0 : index
    %c0_1 = arith.constant 0 : index
    %0 = vector.load %arg1[%c0, %c0_0, %c0_1] : memref<64x8x16xf32, #tpu.memory_space<vmem>>, vector<64x8x16xf32>
    %1 = vector.shape_cast %0 : vector<64x8x16xf32> to vector<512x16xf32>
    %c0_2 = arith.constant 0 : index
    %c0_3 = arith.constant 0 : index
    %2 = vector.load %arg2[%c0_2, %c0_3] : memref<16x64xf32, #tpu.memory_space<vmem>>, vector<16x64xf32>
    %cst = arith.constant dense<0.000000e+00> : vector<512x64xf32>
    %3 = tpu.matmul %1, %2, %cst {dimension_numbers = #tpu.dot_dimension_numbers<[1], [0], [0], [1], [0, 0, 1, 1], [], []>} : vector<512x16xf32>, vector<16x64xf32>, vector<512x64xf32> -> vector<512x64xf32>
    %4 = vector.shape_cast %3 : vector<512x64xf32> to vector<64x8x64xf32>
    %c0_4 = arith.constant 0 : index
    %c0_5 = arith.constant 0 : index
    %c0_6 = arith.constant 0 : index
    %5 = vector.load %arg3[%c0_4, %c0_5, %c0_6] : memref<1x1x64xf32, #tpu.memory_space<vmem>>, vector<1x1x64xf32>
    %6 = vector.broadcast %5 : vector<1x1x64xf32> to vector<64x8x64xf32>
    %7 = arith.addf %4, %6 : vector<64x8x64xf32>
    %cst_7 = arith.constant 0.000000e+00 : f32
    %8 = vector.broadcast %cst_7 : f32 to vector<64x8x64xf32>
    %9 = arith.maximumf %7, %8 : vector<64x8x64xf32>
    %cst_8 = arith.constant dense<0xFF800000> : vector<64x64xf32>
    %10 = vector.multi_reduction <maximumf>, %9, %cst_8 [1] : vector<64x8x64xf32> to vector<64x64xf32>
    %c0_9 = arith.constant 0 : index
    %c0_10 = arith.constant 0 : index
    %11 = vector.load %arg4[%c0_9, %c0_10] : memref<64x64xf32, #tpu.memory_space<vmem>>, vector<64x64xf32>
    tpu.vector_store %arg4[%c0_9, %c0_10], %10 {strides = array<i32>} : memref<64x64xf32, #tpu.memory_space<vmem>>, vector<64x64xf32>,
    return
  }
  func.func @transform_0(%arg0: i32) -> (i32, i32, i32) {
    %c0_i32 = arith.constant 0 : i32
    %c0_i32_0 = arith.constant 0 : i32
    %c0_i32_1 = arith.constant 0 : i32
    return %arg0, %c0_i32, %c0_i32_0 : i32, i32, i32
  }
  func.func @transform_1(%arg0: i32) -> (i32, i32) {
    %c0_i32 = arith.constant 0 : i32
    %c0_i32_0 = arith.constant 0 : i32
    %c0_i32_1 = arith.constant 0 : i32
    return %c0_i32, %c0_i32_0 : i32, i32
  }
  func.func @transform_2(%arg0: i32) -> (i32, i32, i32) {
    %c0_i32 = arith.constant 0 : i32
    %c0_i32_0 = arith.constant 0 : i32
    %c0_i32_1 = arith.constant 0 : i32
    %c0_i32_2 = arith.constant 0 : i32
    return %c0_i32, %c0_i32_0, %c0_i32_1 : i32, i32, i32
  }
  func.func @transform_3(%arg0: i32) -> (i32, i32) {
    %c0_i32 = arith.constant 0 : i32
    %c0_i32_0 = arith.constant 0 : i32
    return %arg0, %c0_i32 : i32, i32
  }
}

</mosaic_0001>

<bundles_post_ra>
// kernel: tpu_custom_call.1
= control target key start
LH: loop header
LB: loop body
LE: loop exit
PB: predicated region body
PF: predicated region fallthrough
CT: control target
= control target key end

     0   :  { %s1541_s12 = smov 0   ;;  %s1968_s0 = inlined_call_operand.vmem [shape: f32[128,8,16], index: 0, kind: input, shape index: {}]   ;;  %s1969_s1 = inlined_call_operand.vmem [shape: f32[16,64], index: 1, kind: input, shape index: {}]   ;;  %s1970_s2 = inlined_call_operand.vmem [shape: f32[1,1,64], index: 2, kind: input, shape index: {}]   ;;  %s1971_s3 = inlined_call_operand.vmem [shape: f32[128,64], index: 3, kind: output, shape index: {}]  }
   0x1 LB: > { %s1422_s13 = sadd.s32 4294967295, %s1519_s12   ;;  %p1426_p0 = scmp.ge.s32.totalorder %s1519_s12, 1  ;;  %s1519_s12 = sphi %s1541_s12, %s13_s12  }
   0x2   : > { %p138_p1 = scmp.lt.s32.totalorder %s1519_s12, 3 }
   0x4   : > { %p139_p2 = pnand %p1426_p0, %p138_p1 }
   0x5   : > { %s1427_s18 = sshll.u32 (!%p139_p2), %s1422_s13, 6  ;;  %s1782_s25 = sshll.u32 (!%p139_p2), %s1422_s13, 3 }
   0x6   : > { %142 = sbr.rel (%p139_p2) target bundleno = 310 (0x136), region = 32  ;;  %p163_p3 = scmp.lt.s32.totalorder (!%p139_p2), %s1427_s18, 127 }
   0x7   : > { %p169_p4 = scmp.lt.s32.totalorder (!%p139_p2), %s1782_s25, 15 }
   0xb   : > { %v239_v0 = vld [vmem:[%s1969_s1 + $0x8] sm:$0xff]  ;;  %v238_v1 = vld [vmem:[%s1969_s1] sm:$0xff]  ;;  %s1973_s18 = smov (!%p163_p3, %s1427_s18), 127  ;;  %vm240_vm0 = vcmask 130048   ;;  %vm774_vm1 = vcmask 523264   ;;  %vm1287_vm2 = vcmask 1041409  }
   0xc   : > { %447 = vmatpush.msra.mxu0 %v239_v0  ;;  %1497 = vmatpush.msra.mxu1 %v239_v0  ;;  %s1428_s19 = sshll.u32 %s1973_s18, 3  ;;  %vm1289_vm3 = vcmask 1042434   ;;  %vm1291_vm4 = vcmask 1043459   ;;  %vm1293_vm5 = vcmask 1044484   ;;  %vm1295_vm6 = vcmask 1045509   ;;  %s1975_s25 = smov (!%p169_p4, %s1782_s25), 15 }
   0xd   : > { %1498 = vmatpush.msra.mxu2 %v239_v0  ;;  %1499 = vmatpush.msra.mxu3 %v239_v0  ;;  %s1560_s22 = scalar_lea.vmem %s1968_s0, %s1428_s19  ;;  %vm1297_vm7 = vcmask 1046534   ;;  %vm1299_vm8 = vcmask 1047559   ;;  %s1430_s26 = sshll.u32 %s1975_s25, 3 }
   0xe   : > { %448 = vmatpush.msra.mxu0 %v238_v1  ;;  %1500 = vmatpush.msra.mxu1 %v238_v1  ;;  %v174_v2 = vld [vmem:[%s1560_s22] sm:$0xff]  ;;  %v175_v6 = vld [vmem:[%s1560_s22 + $0x8] sm:$0xff]  ;;  %v176_v10 = vld [vmem:[%s1560_s22 + $0x10] sm:$0xff]  ;;  %s1816_s29 = scalar_lea.vmem %s1971_s3, %s1430_s26 }
   0xf   : > { %1501 = vmatpush.msra.mxu2 %v238_v1  ;;  %1502 = vmatpush.msra.mxu3 %v238_v1  ;;  %v190_v3 = vld [vmem:[%s1560_s22 + $0x80] sm:$0xff]  ;;  %v191_v7 = vld [vmem:[%s1560_s22 + $0x88] sm:$0xff]  ;;  %v192_v11 = vld [vmem:[%s1560_s22 + $0x90] sm:$0xff] }
  0x10   : > { %v206_v4 = vld [vmem:[%s1560_s22 + $0x100] sm:$0xff]  ;;  %1431 = vmatmul.msk.f32.vlgmr.msra.gmra.mxu0 %vm240_vm0, %v174_v2  ;;  %1447 = vmatmul.msk.f32.vlgmr.msra.gmra.mxu1 %vm240_vm0, %v190_v3  ;;  %v207_v8 = vld [vmem:[%s1560_s22 + $0x108] sm:$0xff]  ;;  %v208_v12 = vld [vmem:[%s1560_s22 + $0x110] sm:$0xff] }
  0x11   : > { %v222_v5 = vld [vmem:[%s1560_s22 + $0x180] sm:$0xff]  ;;  %1463 = vmatmul.msk.f32.vlgmr.msra.gmra.mxu2 %vm240_vm0, %v206_v4  ;;  %v223_v9 = vld [vmem:[%s1560_s22 + $0x188] sm:$0xff]  ;;  %v224_v13 = vld [vmem:[%s1560_s22 + $0x190] sm:$0xff] }
  0x12   : > { %1479 = vmatmul.msk.f32.vlgmr.msra.gmra.mxu3 %vm240_vm0, %v222_v5  ;;  %v177_v14 = vld [vmem:[%s1560_s22 + $0x18] sm:$0xff]  ;;  %v178_v18 = vld [vmem:[%s1560_s22 + $0x20] sm:$0xff]  ;;  %v179_v22 = vld [vmem:[%s1560_s22 + $0x28] sm:$0xff] }
  0x13   : > { %v193_v15 = vld [vmem:[%s1560_s22 + $0x98] sm:$0xff]  ;;  %v194_v19 = vld [vmem:[%s1560_s22 + $0xa0] sm:$0xff]  ;;  %v195_v23 = vld [vmem:[%s1560_s22 + $0xa8] sm:$0xff] }
  0x14   : > { %v209_v16 = vld [vmem:[%s1560_s22 + $0x118] sm:$0xff]  ;;  %v210_v20 = vld [vmem:[%s1560_s22 + $0x120] sm:$0xff]  ;;  %v211_v24 = vld [vmem:[%s1560_s22 + $0x128] sm:$0xff] }
  0x15   : > { %v225_v17 = vld [vmem:[%s1560_s22 + $0x198] sm:$0xff]  ;;  %v226_v21 = vld [vmem:[%s1560_s22 + $0x1a0] sm:$0xff]  ;;  %v227_v25 = vld [vmem:[%s1560_s22 + $0x1a8] sm:$0xff] }
  0x16   : > { %v180_v26 = vld [vmem:[%s1560_s22 + $0x30] sm:$0xff]  ;;  %v181_v30 = vld [vmem:[%s1560_s22 + $0x38] sm:$0xff]  ;;  %v182_v34 = vld [vmem:[%s1560_s22 + $0x40] sm:$0xff] }
  0x17   : > { %v196_v27 = vld [vmem:[%s1560_s22 + $0xb0] sm:$0xff]  ;;  %v197_v31 = vld [vmem:[%s1560_s22 + $0xb8] sm:$0xff]  ;;  %v198_v35 = vld [vmem:[%s1560_s22 + $0xc0] sm:$0xff] }
  0x18   : > { %1432 = vmatmul.msk.f32.gmra.mxu0 %vm240_vm0, %v175_v6  ;;  %1448 = vmatmul.msk.f32.gmra.mxu1 %vm240_vm0, %v191_v7  ;;  %v212_v28 = vld [vmem:[%s1560_s22 + $0x130] sm:$0xff]  ;;  %v213_v32 = vld [vmem:[%s1560_s22 + $0x138] sm:$0xff]  ;;  %v214_v36 = vld [vmem:[%s1560_s22 + $0x140] sm:$0xff] }
  0x19   : > { %1464 = vmatmul.msk.f32.gmra.mxu2 %vm240_vm0, %v207_v8  ;;  %v228_v29 = vld [vmem:[%s1560_s22 + $0x1b0] sm:$0xff]  ;;  %v229_v33 = vld [vmem:[%s1560_s22 + $0x1b8] sm:$0xff]  ;;  %v230_v37 = vld [vmem:[%s1560_s22 + $0x1c0] sm:$0xff] }
  0x1a   : > { %1480 = vmatmul.msk.f32.gmra.mxu3 %vm240_vm0, %v223_v9  ;;  %v183_v38 = vld [vmem:[%s1560_s22 + $0x48] sm:$0xff]  ;;  %v184_v42 = vld [vmem:[%s1560_s22 + $0x50] sm:$0xff]  ;;  %v185_v46 = vld [vmem:[%s1560_s22 + $0x58] sm:$0xff] }
  0x1b   : > { %v199_v39 = vld [vmem:[%s1560_s22 + $0xc8] sm:$0xff]  ;;  %v200_v43 = vld [vmem:[%s1560_s22 + $0xd0] sm:$0xff]  ;;  %v201_v47 = vld [vmem:[%s1560_s22 + $0xd8] sm:$0xff] }
  0x1c   : > { %v215_v40 = vld [vmem:[%s1560_s22 + $0x148] sm:$0xff]  ;;  %v216_v44 = vld [vmem:[%s1560_s22 + $0x150] sm:$0xff]  ;;  %v217_v48 = vld [vmem:[%s1560_s22 + $0x158] sm:$0xff] }
  0x1d   : > { %v231_v41 = vld [vmem:[%s1560_s22 + $0x1c8] sm:$0xff]  ;;  %v232_v45 = vld [vmem:[%s1560_s22 + $0x1d0] sm:$0xff]  ;;  %v233_v49 = vld [vmem:[%s1560_s22 + $0x1d8] sm:$0xff] }
  0x1e   : > { %v186_v50 = vld [vmem:[%s1560_s22 + $0x60] sm:$0xff]  ;;  %v187_v54 = vld [vmem:[%s1560_s22 + $0x68] sm:$0xff]  ;;  %v188_v58 = vld [vmem:[%s1560_s22 + $0x70] sm:$0xff] }
  0x1f   : > { %v202_v51 = vld [vmem:[%s1560_s22 + $0xe0] sm:$0xff]  ;;  %v203_v55 = vld [vmem:[%s1560_s22 + $0xe8] sm:$0xff]  ;;  %v204_v59 = vld [vmem:[%s1560_s22 + $0xf0] sm:$0xff] }
  0x20   : > { %1433 = vmatmul.msk.f32.gmra.mxu0 %vm240_vm0, %v176_v10  ;;  %1449 = vmatmul.msk.f32.gmra.mxu1 %vm240_vm0, %v192_v11  ;;  %v218_v52 = vld [vmem:[%s1560_s22 + $0x160] sm:$0xff]  ;;  %v219_v56 = vld [vmem:[%s1560_s22 + $0x168] sm:$0xff]  ;;  %v220_v60 = vld [vmem:[%s1560_s22 + $0x170] sm:$0xff] }
  0x21   : > { %1465 = vmatmul.msk.f32.gmra.mxu2 %vm240_vm0, %v208_v12  ;;  %v234_v53 = vld [vmem:[%s1560_s22 + $0x1e0] sm:$0xff]  ;;  %v235_v57 = vld [vmem:[%s1560_s22 + $0x1e8] sm:$0xff]  ;;  %v236_v61 = vld [vmem:[%s1560_s22 + $0x1f0] sm:$0xff] }
  0x22   : > { %1481 = vmatmul.msk.f32.gmra.mxu3 %vm240_vm0, %v224_v13  ;;  %v189_v62 = vld [vmem:[%s1560_s22 + $0x78] sm:$0xff]  ;;  %v1693_v2 = vld [vmem:[%s1970_s2] ss:$0 sm:$0xff] }
  0x23   : > { %v205_v63 = vld [vmem:[%s1560_s22 + $0xf8] sm:$0xff] }
  0x24   : > { %v221_v0 = vld [vmem:[%s1560_s22 + $0x178] sm:$0xff] }
  0x25   : > { %v237_v1 = vld [vmem:[%s1560_s22 + $0x1f8] sm:$0xff] }
  0x28   : > { %1434 = vmatmul.msk.f32.gmra.mxu0 %vm240_vm0, %v177_v14  ;;  %1450 = vmatmul.msk.f32.gmra.mxu1 %vm240_vm0, %v193_v15 }
  0x29   : > { %1466 = vmatmul.msk.f32.gmra.mxu2 %vm240_vm0, %v209_v16 }
  0x2a   : > { %1482 = vmatmul.msk.f32.gmra.mxu3 %vm240_vm0, %v225_v17 }
  0x30   : > { %1435 = vmatmul.msk.f32.gmra.mxu0 %vm240_vm0, %v178_v18  ;;  %1451 = vmatmul.msk.f32.gmra.mxu1 %vm240_vm0, %v194_v19 }
  0x31   : > { %1467 = vmatmul.msk.f32.gmra.mxu2 %vm240_vm0, %v210_v20 }
  0x32   : > { %1483 = vmatmul.msk.f32.gmra.mxu3 %vm240_vm0, %v226_v21 }
  0x38   : > { %1436 = vmatmul.msk.f32.gmra.mxu0 %vm240_vm0, %v179_v22  ;;  %1452 = vmatmul.msk.f32.gmra.mxu1 %vm240_vm0, %v195_v23 }
  0x39   : > { %1468 = vmatmul.msk.f32.gmra.mxu2 %vm240_vm0, %v211_v24 }
  0x3a   : > { %1484 = vmatmul.msk.f32.gmra.mxu3 %vm240_vm0, %v227_v25 }
  0x40   : > { %1437 = vmatmul.msk.f32.gmra.mxu0 %vm240_vm0, %v180_v26  ;;  %1453 = vmatmul.msk.f32.gmra.mxu1 %vm240_vm0, %v196_v27 }
  0x41   : > { %1469 = vmatmul.msk.f32.gmra.mxu2 %vm240_vm0, %v212_v28 }
  0x42   : > { %1485 = vmatmul.msk.f32.gmra.mxu3 %vm240_vm0, %v228_v29 }
  0x48   : > { %1438 = vmatmul.msk.f32.gmra.mxu0 %vm240_vm0, %v181_v30  ;;  %1454 = vmatmul.msk.f32.gmra.mxu1 %vm240_vm0, %v197_v31 }
  0x49   : > { %1470 = vmatmul.msk.f32.gmra.mxu2 %vm240_vm0, %v213_v32 }
  0x4a   : > { %1486 = vmatmul.msk.f32.gmra.mxu3 %vm240_vm0, %v229_v33 }
  0x50   : > { %1439 = vmatmul.msk.f32.gmra.mxu0 %vm240_vm0, %v182_v34  ;;  %1455 = vmatmul.msk.f32.gmra.mxu1 %vm240_vm0, %v198_v35 }
  0x51   : > { %1471 = vmatmul.msk.f32.gmra.mxu2 %vm240_vm0, %v214_v36 }
  0x52   : > { %1487 = vmatmul.msk.f32.gmra.mxu3 %vm240_vm0, %v230_v37 }
  0x58   : > { %1440 = vmatmul.msk.f32.gmra.mxu0 %vm240_vm0, %v183_v38  ;;  %1456 = vmatmul.msk.f32.gmra.mxu1 %vm240_vm0, %v199_v39 }
  0x59   : > { %1472 = vmatmul.msk.f32.gmra.mxu2 %vm240_vm0, %v215_v40 }
  0x5a   : > { %1488 = vmatmul.msk.f32.gmra.mxu3 %vm240_vm0, %v231_v41 }
  0x60   : > { %1441 = vmatmul.msk.f32.gmra.mxu0 %vm240_vm0, %v184_v42  ;;  %1457 = vmatmul.msk.f32.gmra.mxu1 %vm240_vm0, %v200_v43 }
  0x61   : > { %1473 = vmatmul.msk.f32.gmra.mxu2 %vm240_vm0, %v216_v44 }
  0x62   : > { %1489 = vmatmul.msk.f32.gmra.mxu3 %vm240_vm0, %v232_v45 }
  0x68   : > { %1442 = vmatmul.msk.f32.gmra.mxu0 %vm240_vm0, %v185_v46  ;;  %1458 = vmatmul.msk.f32.gmra.mxu1 %vm240_vm0, %v201_v47 }
  0x69   : > { %1474 = vmatmul.msk.f32.gmra.mxu2 %vm240_vm0, %v217_v48 }
  0x6a   : > { %1490 = vmatmul.msk.f32.gmra.mxu3 %vm240_vm0, %v233_v49 }
  0x70   : > { %1443 = vmatmul.msk.f32.gmra.mxu0 %vm240_vm0, %v186_v50  ;;  %1459 = vmatmul.msk.f32.gmra.mxu1 %vm240_vm0, %v202_v51 }
  0x71   : > { %1475 = vmatmul.msk.f32.gmra.mxu2 %vm240_vm0, %v218_v52 }
  0x72   : > { %1491 = vmatmul.msk.f32.gmra.mxu3 %vm240_vm0, %v234_v53 }
  0x78   : > { %1444 = vmatmul.msk.f32.gmra.mxu0 %vm240_vm0, %v187_v54  ;;  %1460 = vmatmul.msk.f32.gmra.mxu1 %vm240_vm0, %v203_v55 }
  0x79   : > { %1476 = vmatmul.msk.f32.gmra.mxu2 %vm240_vm0, %v219_v56 }
  0x7a   : > { %1492 = vmatmul.msk.f32.gmra.mxu3 %vm240_vm0, %v235_v57 }
  0x80   : > { %1445 = vmatmul.msk.f32.gmra.mxu0 %vm240_vm0, %v188_v58  ;;  %1461 = vmatmul.msk.f32.gmra.mxu1 %vm240_vm0, %v204_v59 }
  0x81   : > { %1477 = vmatmul.msk.f32.gmra.mxu2 %vm240_vm0, %v220_v60 }
  0x82   : > { %1493 = vmatmul.msk.f32.gmra.mxu3 %vm240_vm0, %v236_v61 }
  0x88   : > { %1446 = vmatmul.msk.f32.gmra.mxu0 %vm240_vm0, %v189_v62  ;;  %1462 = vmatmul.msk.f32.gmra.mxu1 %vm240_vm0, %v205_v63 }
  0x89   : > { %1478 = vmatmul.msk.f32.gmra.mxu2 %vm240_vm0, %v221_v0 }
  0x8a   : > { %1494 = vmatmul.msk.f32.gmra.mxu3 %vm240_vm0, %v237_v1 }
  0x8d   : > { %v450_v3 = vpop.f32.mrf.mxu0  ;;  %v498_v4 = vpop.f32.mrf.mxu1 }
  0x8e   : > { %v646_v5 = vadd.f32 %v1693_v2, %v450_v3  ;;  %v662_v6 = vadd.f32 %v1693_v2, %v498_v4 }
  0x90   : > { %v710_v7 = vmax.f32 %v646_v5, 0.0  ;;  %v726_v8 = vmax.f32 %v662_v6, 0.0 }
  0x92   : > { %v775_v9 = vsel %vm774_vm1, %v710_v7, -inf  ;;  %v887_v10 = vsel %vm774_vm1, %v726_v8, -inf }
  0x93   : > { %v776_v19 = vrot.slane %v775_v9, 4  ;;  %v888_v20 = vrot.slane %v887_v10, 4 }
  0x94   : > { %v546_v11 = vpop.f32.mrf.mxu2 }
  0x95   : > { %v594_v12 = vpop.f32.mrf.mxu3  ;;  %v678_v13 = vadd.f32 %v1693_v2, %v546_v11  ;;  %v453_v15 = vpop.f32.mrf.mxu0  ;;  %v777_v30 = vmax.f32 %v775_v9, %v776_v19  ;;  %v889_v31 = vmax.f32 %v887_v10, %v888_v20 }
  0x96   : > { %v694_v14 = vadd.f32 %v1693_v2, %v594_v12  ;;  %v501_v16 = vpop.f32.mrf.mxu1  ;;  %v647_v17 = vadd.f32 %v1693_v2, %v453_v15 }
  0x97   : > { %v663_v18 = vadd.f32 %v1693_v2, %v501_v16  ;;  %v742_v21 = vmax.f32 %v678_v13, 0.0  ;;  %v778_v44 = vrot.slane %v777_v30, 2  ;;  %v890_v45 = vrot.slane %v889_v31, 2 }
  0x98   : > { %v758_v22 = vmax.f32 %v694_v14, 0.0  ;;  %v711_v23 = vmax.f32 %v647_v17, 0.0 }
  0x99   : > { %v727_v24 = vmax.f32 %v663_v18, 0.0  ;;  %v999_v25 = vsel %vm774_vm1, %v742_v21, -inf  ;;  %v779_v58 = vmax.f32 %v777_v30, %v778_v44  ;;  %v891_v59 = vmax.f32 %v889_v31, %v890_v45 }
  0x9a   : > { %v1111_v26 = vsel %vm774_vm1, %v758_v22, -inf  ;;  %v1000_v27 = vrot.slane %v999_v25, 4  ;;  %v782_v28 = vsel %vm774_vm1, %v711_v23, -inf }
  0x9b   : > { %v894_v29 = vsel %vm774_vm1, %v727_v24, -inf  ;;  %v783_v32 = vrot.slane %v782_v28, 4  ;;  %v1112_v34 = vrot.slane %v1111_v26, 4  ;;  %v780_v13 = vrot.slane %v779_v58, 1 }
  0x9c   : > { %v895_v33 = vrot.slane %v894_v29, 4  ;;  %v549_v35 = vpop.f32.mrf.mxu2  ;;  %v1001_v37 = vmax.f32 %v999_v25, %v1000_v27  ;;  %v892_v14 = vrot.slane %v891_v59, 1 }
  0x9d   : > { %v597_v36 = vpop.f32.mrf.mxu3  ;;  %v456_v38 = vpop.f32.mrf.mxu0  ;;  %v784_v40 = vmax.f32 %v782_v28, %v783_v32  ;;  %v679_v42 = vadd.f32 %v1693_v2, %v549_v35  ;;  %v1113_v48 = vmax.f32 %v1111_v26, %v1112_v34 }
  0x9e   : > { %v504_v39 = vpop.f32.mrf.mxu1  ;;  %v896_v41 = vmax.f32 %v894_v29, %v895_v33  ;;  %v695_v43 = vadd.f32 %v1693_v2, %v597_v36  ;;  %v648_v46 = vadd.f32 %v1693_v2, %v456_v38  ;;  %v1002_v51 = vrot.slane %v1001_v37, 2 }
  0x9f   : > { %v664_v47 = vadd.f32 %v1693_v2, %v504_v39  ;;  %v743_v49 = vmax.f32 %v679_v42, 0.0  ;;  %v785_v54 = vrot.slane %v784_v40, 2  ;;  %v1114_v62 = vrot.slane %v1113_v48, 2 }
  0xa0   : > { %v759_v50 = vmax.f32 %v695_v43, 0.0  ;;  %v712_v52 = vmax.f32 %v648_v46, 0.0  ;;  %v897_v55 = vrot.slane %v896_v41, 2  ;;  %v1003_v4 = vmax.f32 %v1001_v37, %v1002_v51 }
  0xa1   : > { %v728_v53 = vmax.f32 %v664_v47, 0.0  ;;  %v1006_v56 = vsel %vm774_vm1, %v743_v49, -inf  ;;  %v786_v7 = vmax.f32 %v784_v40, %v785_v54  ;;  %v1115_v17 = vmax.f32 %v1113_v48, %v1114_v62 }
  0xa2   : > { %v1118_v57 = vsel %vm774_vm1, %v759_v50, -inf  ;;  %v1007_v60 = vrot.slane %v1006_v56, 4  ;;  %v789_v63 = vsel %vm774_vm1, %v712_v52, -inf  ;;  %v898_v8 = vmax.f32 %v896_v41, %v897_v55 }
  0xa3   : > { %v1119_v61 = vrot.slane %v1118_v57, 4  ;;  %v901_v0 = vsel %vm774_vm1, %v728_v53, -inf  ;;  %v790_v15 = vrot.slane %v789_v63, 4  ;;  %v1004_v21 = vrot.slane %v1003_v4, 1 }
  0xa4   : > { %v552_v1 = vpop.f32.mrf.mxu2  ;;  %v1008_v5 = vmax.f32 %v1006_v56, %v1007_v60  ;;  %v902_v16 = vrot.slane %v901_v0, 4  ;;  %v787_v25 = vrot.slane %v786_v7, 1  ;;  %v899_v26 = vrot.slane %v898_v8, 1 }
  0xa5   : > { %v600_v3 = vpop.f32.mrf.mxu3  ;;  %v1120_v6 = vmax.f32 %v1118_v57, %v1119_v61  ;;  %v680_v9 = vadd.f32 %v1693_v2, %v552_v1  ;;  %v459_v11 = vpop.f32.mrf.mxu0  ;;  %v791_v29 = vmax.f32 %v789_v63, %v790_v15  ;;  %v781_v33 = vmax.f32 %v779_v58, %v780_v13 }
  0xa6   : > { %v696_v10 = vadd.f32 %v1693_v2, %v600_v3  ;;  %v507_v12 = vpop.f32.mrf.mxu1  ;;  %v1009_v18 = vrot.slane %v1008_v5, 2  ;;  %v649_v23 = vadd.f32 %v1693_v2, %v459_v11  ;;  %v903_v30 = vmax.f32 %v901_v0, %v902_v16 }
  0xa7   : > { %v744_v19 = vmax.f32 %v680_v9, 0.0  ;;  %v1121_v22 = vrot.slane %v1120_v6, 2  ;;  %v665_v24 = vadd.f32 %v1693_v2, %v507_v12  ;;  %v893_v39 = vmax.f32 %v891_v59, %v892_v14 }
  0xa8   : > { %v760_v20 = vmax.f32 %v696_v10, 0.0  ;;  %v1010_v34 = vmax.f32 %v1008_v5, %v1009_v18  ;;  %v713_v35 = vmax.f32 %v649_v23, 0.0  ;;  %v1116_v43 = vrot.slane %v1115_v17, 1 }
  0xa9   : > { %v1013_v27 = vsel %vm774_vm1, %v744_v19, -inf  ;;  %v729_v36 = vmax.f32 %v665_v24, 0.0  ;;  %v1122_v40 = vmax.f32 %v1120_v6, %v1121_v22  ;;  %v788_v44 = vmax.f32 %v786_v7, %v787_v25 }
  0xaa   : > { %v1125_v28 = vsel %vm774_vm1, %v760_v20, -inf  ;;  %v1014_v31 = vrot.slane %v1013_v27, 4  ;;  %v796_v45 = vsel %vm774_vm1, %v713_v35, -inf  ;;  %v1005_v47 = vmax.f32 %v1003_v4, %v1004_v21 }
  0xab   : > { %v1126_v32 = vrot.slane %v1125_v28, 4  ;;  %v908_v46 = vsel %vm774_vm1, %v729_v36, -inf  ;;  %v900_v48 = vmax.f32 %v898_v8, %v899_v26  ;;  %v792_v49 = vrot.slane %v791_v29, 2 }
  0xac   : > { %v555_v37 = vpop.f32.mrf.mxu2  ;;  %v1015_v41 = vmax.f32 %v1013_v27, %v1014_v31  ;;  %v904_v50 = vrot.slane %v903_v30, 2  ;;  %v1011_v51 = vrot.slane %v1010_v34, 1  ;;  %v797_v53 = vrot.slane %v796_v45, 4 }
  0xad   : > { %v603_v38 = vpop.f32.mrf.mxu3  ;;  %v1127_v42 = vmax.f32 %v1125_v28, %v1126_v32  ;;  %v909_v54 = vrot.slane %v908_v46, 4  ;;  %v462_v55 = vpop.f32.mrf.mxu0  ;;  %v1123_v56 = vrot.slane %v1122_v40, 1  ;;  %v681_v58 = vadd.f32 %v1693_v2, %v555_v37 }
  0xae   : > { %v1016_v52 = vrot.slane %v1015_v41, 2  ;;  %v697_v59 = vadd.f32 %v1693_v2, %v603_v38  ;;  %v510_v60 = vpop.f32.mrf.mxu1  ;;  %v1117_v61 = vmax.f32 %v1115_v17, %v1116_v43  ;;  %v1726_v62 = vsel %vm1287_vm2, %v788_v44, %v781_v33 }
  0xaf   : > { %v1128_v57 = vrot.slane %v1127_v42, 2  ;;  %v798_v63 = vmax.f32 %v796_v45, %v797_v53  ;;  %v910_v0 = vmax.f32 %v908_v46, %v909_v54  ;;  %v793_v1 = vmax.f32 %v791_v29, %v792_v49 }
  0xb0   : > { %v905_v3 = vmax.f32 %v903_v30, %v904_v50  ;;  %v745_v4 = vmax.f32 %v681_v58, 0.0  ;;  %v761_v5 = vmax.f32 %v697_v59, 0.0  ;;  %v1308_v6 = vsel %vm1287_vm2, %v900_v48, %v893_v39 }
  0xb1   : > { %v1012_v7 = vmax.f32 %v1010_v34, %v1011_v51  ;;  %v1017_v8 = vmax.f32 %v1015_v41, %v1016_v52  ;;  %v650_v9 = vadd.f32 %v1693_v2, %v462_v55  ;;  %v1124_v11 = vmax.f32 %v1122_v40, %v1123_v56 }
  0xb2   : > { %v1129_v12 = vmax.f32 %v1127_v42, %v1128_v57  ;;  %v1020_v13 = vsel %vm774_vm1, %v745_v4, -inf  ;;  %v1132_v14 = vsel %vm774_vm1, %v761_v5, -inf  ;;  %v799_v15 = vrot.slane %v798_v63, 2 }
  0xb3   : > { %v911_v16 = vrot.slane %v910_v0, 2  ;;  %v1021_v17 = vrot.slane %v1020_v13, 4  ;;  %v1133_v18 = vrot.slane %v1132_v14, 4  ;;  %v794_v20 = vrot.slane %v793_v1, 1 }
  0xb4   : > { %v558_v10 = vpop.f32.mrf.mxu2  ;;  %v906_v21 = vrot.slane %v905_v3, 1  ;;  %v714_v22 = vmax.f32 %v650_v9, 0.0  ;;  %v666_v23 = vadd.f32 %v1693_v2, %v510_v60  ;;  %v1322_v24 = vsel %vm1287_vm2, %v1012_v7, %v1005_v47 }
  0xb5   : > { %v606_v19 = vpop.f32.mrf.mxu3  ;;  %v1018_v25 = vrot.slane %v1017_v8, 1  ;;  %v1022_v26 = vmax.f32 %v1020_v13, %v1021_v17  ;;  %v1134_v27 = vmax.f32 %v1132_v14, %v1133_v18  ;;  %v682_v30 = vadd.f32 %v1693_v2, %v558_v10  ;;  %v465_v36 = vpop.f32.mrf.mxu0 }
  0xb6   : > { %v803_v28 = vsel %vm774_vm1, %v714_v22, -inf  ;;  %v730_v29 = vmax.f32 %v666_v23, 0.0  ;;  %v698_v31 = vadd.f32 %v1693_v2, %v606_v19  ;;  %v1130_v32 = vrot.slane %v1129_v12, 1  ;;  %v513_v41 = vpop.f32.mrf.mxu1 }
  0xb7   : > { %v800_v33 = vmax.f32 %v798_v63, %v799_v15  ;;  %v912_v34 = vmax.f32 %v910_v0, %v911_v16  ;;  %v1023_v35 = vrot.slane %v1022_v26, 2  ;;  %v804_v37 = vrot.slane %v803_v28, 4 }
  0xb8   : > { %v915_v38 = vsel %vm774_vm1, %v730_v29, -inf  ;;  %v746_v39 = vmax.f32 %v682_v30, 0.0  ;;  %v762_v40 = vmax.f32 %v698_v31, 0.0  ;;  %v795_v42 = vmax.f32 %v793_v1, %v794_v20 }
  0xb9   : > { %v907_v43 = vmax.f32 %v905_v3, %v906_v21  ;;  %v1024_v44 = vmax.f32 %v1022_v26, %v1023_v35  ;;  %v1135_v45 = vrot.slane %v1134_v27, 2  ;;  %v805_v46 = vmax.f32 %v803_v28, %v804_v37 }
  0xba   : > { %v916_v47 = vrot.slane %v915_v38, 4  ;;  %v1027_v48 = vsel %vm774_vm1, %v746_v39, -inf  ;;  %v1139_v49 = vsel %vm774_vm1, %v762_v40, -inf  ;;  %v1019_v50 = vmax.f32 %v1017_v8, %v1018_v25 }
  0xbb   : > { %v1131_v51 = vmax.f32 %v1129_v12, %v1130_v32  ;;  %v1028_v52 = vrot.slane %v1027_v48, 4  ;;  %v1140_v53 = vrot.slane %v1139_v49, 4  ;;  %v1336_v55 = vsel %vm1287_vm2, %v1124_v11, %v1117_v61 }
  0xbc   : > { %v561_v54 = vpop.f32.mrf.mxu2  ;;  %v801_v56 = vrot.slane %v800_v33, 1  ;;  %v913_v57 = vrot.slane %v912_v34, 1  ;;  %v651_v58 = vadd.f32 %v1693_v2, %v465_v36  ;;  %v1290_v59 = vsel %vm1289_vm3, %v795_v42, %v1726_v62 }
  0xbd   : > { %v1309_v60 = vsel %vm1289_vm3, %v907_v43, %v1308_v6  ;;  %v1136_v63 = vmax.f32 %v1134_v27, %v1135_v45  ;;  %v917_v0 = vmax.f32 %v915_v38, %v916_v47  ;;  %v609_v1 = vpop.f32.mrf.mxu3  ;;  %v1025_v3 = vrot.slane %v1024_v44, 1  ;;  %v468_v17 = vpop.f32.mrf.mxu0 }
  0xbe   : > { %v806_v4 = vrot.slane %v805_v46, 2  ;;  %v715_v5 = vmax.f32 %v651_v58, 0.0  ;;  %v667_v7 = vadd.f32 %v1693_v2, %v513_v41  ;;  %v1323_v8 = vsel %vm1289_vm3, %v1019_v50, %v1322_v24  ;;  %v516_v22 = vpop.f32.mrf.mxu1 }
  0xbf   : > { %v1748_v61 = vsel %vm1289_vm3, %v1131_v51, %v1336_v55  ;;  %v1029_v9 = vmax.f32 %v1027_v48, %v1028_v52  ;;  %v1141_v10 = vmax.f32 %v1139_v49, %v1140_v53  ;;  %v802_v11 = vmax.f32 %v800_v33, %v801_v56 }
  0xc0   : > { %v914_v12 = vmax.f32 %v912_v34, %v913_v57  ;;  %v810_v62 = vsel %vm774_vm1, %v715_v5, -inf  ;;  %v731_v6 = vmax.f32 %v667_v7, 0.0  ;;  %v1137_v13 = vrot.slane %v1136_v63, 1 }
  0xc1   : > { %v918_v14 = vrot.slane %v917_v0, 2  ;;  %v811_v15 = vrot.slane %v810_v62, 4  ;;  %v683_v16 = vadd.f32 %v1693_v2, %v561_v54  ;;  %v1026_v18 = vmax.f32 %v1024_v44, %v1025_v3 }
  0xc2   : > { %v807_v19 = vmax.f32 %v805_v46, %v806_v4  ;;  %v922_v20 = vsel %vm774_vm1, %v731_v6, -inf  ;;  %v699_v21 = vadd.f32 %v1693_v2, %v609_v1  ;;  %v1030_v23 = vrot.slane %v1029_v9, 2 }
  0xc3   : > { %v1142_v24 = vrot.slane %v1141_v10, 2  ;;  %v812_v25 = vmax.f32 %v810_v62, %v811_v15  ;;  %v923_v26 = vrot.slane %v922_v20, 4  ;;  %v1755_v27 = vsel %vm1291_vm4, %v802_v11, %v1290_v59 }
  0xc4   : > { %v1758_v28 = vsel %vm1291_vm4, %v914_v12, %v1309_v60  ;;  %v747_v29 = vmax.f32 %v683_v16, 0.0  ;;  %v763_v30 = vmax.f32 %v699_v21, 0.0  ;;  %v1138_v31 = vmax.f32 %v1136_v63, %v1137_v13  ;;  %v564_v35 = vpop.f32.mrf.mxu2 }
  0xc5   : > { %v919_v32 = vmax.f32 %v917_v0, %v918_v14  ;;  %v813_v33 = vrot.slane %v812_v25, 2  ;;  %v924_v34 = vmax.f32 %v922_v20, %v923_v26  ;;  %v1761_v36 = vsel %vm1291_vm4, %v1026_v18, %v1323_v8  ;;  %v612_v44 = vpop.f32.mrf.mxu3  ;;  %v471_v63 = vpop.f32.mrf.mxu0 }
  0xc6   : > { %v1034_v37 = vsel %vm774_vm1, %v747_v29, -inf  ;;  %v1146_v38 = vsel %vm774_vm1, %v763_v30, -inf  ;;  %v652_v39 = vadd.f32 %v1693_v2, %v468_v17  ;;  %v808_v40 = vrot.slane %v807_v19, 1  ;;  %v519_v5 = vpop.f32.mrf.mxu1 }
  0xc7   : > { %v1031_v41 = vmax.f32 %v1029_v9, %v1030_v23  ;;  %v1143_v42 = vmax.f32 %v1141_v10, %v1142_v24  ;;  %v925_v43 = vrot.slane %v924_v34, 2  ;;  %v814_v45 = vmax.f32 %v812_v25, %v813_v33 }
  0xc8   : > { %v1035_v46 = vrot.slane %v1034_v37, 4  ;;  %v1147_v47 = vrot.slane %v1146_v38, 4  ;;  %v716_v48 = vmax.f32 %v652_v39, 0.0  ;;  %v920_v49 = vrot.slane %v919_v32, 1 }
  0xc9   : > { %v926_v50 = vmax.f32 %v924_v34, %v925_v43  ;;  %v668_v51 = vadd.f32 %v1693_v2, %v516_v22  ;;  %v684_v52 = vadd.f32 %v1693_v2, %v564_v35  ;;  %v700_v56 = vadd.f32 %v1693_v2, %v612_v44 }
  0xca   : > { %v1036_v53 = vmax.f32 %v1034_v37, %v1035_v46  ;;  %v1148_v54 = vmax.f32 %v1146_v38, %v1147_v47  ;;  %v817_v55 = vsel %vm774_vm1, %v716_v48, -inf  ;;  %v1032_v57 = vrot.slane %v1031_v41, 1 }
  0xcb   : > { %v1144_v58 = vrot.slane %v1143_v42, 1  ;;  %v818_v59 = vrot.slane %v817_v55, 4  ;;  %v732_v60 = vmax.f32 %v668_v51, 0.0  ;;  %v809_v0 = vmax.f32 %v807_v19, %v808_v40 }
  0xcc   : > { %v815_v1 = vrot.slane %v814_v45, 1  ;;  %v748_v3 = vmax.f32 %v684_v52, 0.0  ;;  %v764_v4 = vmax.f32 %v700_v56, 0.0  ;;  %v927_v7 = vrot.slane %v926_v50, 1  ;;  %v567_v17 = vpop.f32.mrf.mxu2 }
  0xcd   : > { %v1037_v8 = vrot.slane %v1036_v53, 2  ;;  %v819_v9 = vmax.f32 %v817_v55, %v818_v59  ;;  %v929_v10 = vsel %vm774_vm1, %v732_v60, -inf  ;;  %v921_v11 = vmax.f32 %v919_v32, %v920_v49  ;;  %v615_v26 = vpop.f32.mrf.mxu3  ;;  %v474_v43 = vpop.f32.mrf.mxu0 }
  0xce   : > { %v1149_v12 = vrot.slane %v1148_v54, 2  ;;  %v930_v62 = vrot.slane %v929_v10, 4  ;;  %v1041_v6 = vsel %vm774_vm1, %v748_v3, -inf  ;;  %v1033_v13 = vmax.f32 %v1031_v41, %v1032_v57  ;;  %v522_v47 = vpop.f32.mrf.mxu1 }
  0xcf   : > { %v1145_v14 = vmax.f32 %v1143_v42, %v1144_v58  ;;  %v1042_v15 = vrot.slane %v1041_v6, 4  ;;  %v1153_v16 = vsel %vm774_vm1, %v764_v4, -inf  ;;  %v816_v18 = vmax.f32 %v814_v45, %v815_v1 }
  0xd0   : > { %v820_v19 = vrot.slane %v819_v9, 2  ;;  %v931_v20 = vmax.f32 %v929_v10, %v930_v62  ;;  %v1154_v21 = vrot.slane %v1153_v16, 4  ;;  %v1338_v22 = vsel %vm1291_vm4, %v1138_v31, %v1748_v61 }
  0xd1   : > { %v928_v23 = vmax.f32 %v926_v50, %v927_v7  ;;  %v1038_v24 = vmax.f32 %v1036_v53, %v1037_v8  ;;  %v653_v25 = vadd.f32 %v1693_v2, %v471_v63  ;;  %v1294_v29 = vsel %vm1293_vm5, %v809_v0, %v1755_v27 }
  0xd2   : > { %v1311_v30 = vsel %vm1293_vm5, %v921_v11, %v1758_v28  ;;  %v1150_v32 = vmax.f32 %v1148_v54, %v1149_v12  ;;  %v1043_v33 = vmax.f32 %v1041_v6, %v1042_v15  ;;  %v932_v34 = vrot.slane %v931_v20, 2 }
  0xd3   : > { %v1155_v35 = vmax.f32 %v1153_v16, %v1154_v21  ;;  %v717_v61 = vmax.f32 %v653_v25, 0.0  ;;  %v669_v31 = vadd.f32 %v1693_v2, %v519_v5  ;;  %v1787_v37 = vsel %vm1293_vm5, %v1033_v13, %v1761_v36 }
  0xd4   : > { %v1790_v27 = vsel %vm1293_vm5, %v1145_v14, %v1338_v22  ;;  %v1296_v28 = vsel %vm1295_vm6, %v816_v18, %v1294_v29  ;;  %v821_v38 = vmax.f32 %v819_v9, %v820_v19  ;;  %v1794_v39 = vsel %vm1295_vm6, %v928_v23, %v1311_v30  ;;  %v570_v59 = vpop.f32.mrf.mxu2 }
  0xd5   : > { %v1039_v40 = vrot.slane %v1038_v24, 1  ;;  %v824_v41 = vsel %vm774_vm1, %v717_v61, -inf  ;;  %v733_v42 = vmax.f32 %v669_v31, 0.0  ;;  %v1151_v44 = vrot.slane %v1150_v32, 1  ;;  %v618_v8 = vpop.f32.mrf.mxu3  ;;  %v477_v23 = vpop.f32.mrf.mxu0 }
  0xd6   : > { %v1044_v36 = vrot.slane %v1043_v33, 2  ;;  %v825_v45 = vrot.slane %v824_v41, 4  ;;  %v685_v46 = vadd.f32 %v1693_v2, %v567_v17  ;;  %v933_v48 = vmax.f32 %v931_v20, %v932_v34  ;;  %v525_v30 = vpop.f32.mrf.mxu1 }
  0xd7   : > { %v1156_v49 = vrot.slane %v1155_v35, 2  ;;  %v936_v50 = vsel %vm774_vm1, %v733_v42, -inf  ;;  %v701_v51 = vadd.f32 %v1693_v2, %v615_v26  ;;  %v822_v52 = vrot.slane %v821_v38, 1 }
  0xd8   : > { %v826_v53 = vmax.f32 %v824_v41, %v825_v45  ;;  %v937_v54 = vrot.slane %v936_v50, 4  ;;  %v1040_v55 = vmax.f32 %v1038_v24, %v1039_v40  ;;  %v749_v56 = vmax.f32 %v685_v46, 0.0 }
  0xd9   : > { %v765_v57 = vmax.f32 %v701_v51, 0.0  ;;  %v654_v58 = vadd.f32 %v1693_v2, %v474_v43  ;;  %v1152_v60 = vmax.f32 %v1150_v32, %v1151_v44  ;;  %v1045_v63 = vmax.f32 %v1043_v33, %v1044_v36 }
  0xda   : > { %v827_v0 = vrot.slane %v826_v53, 2  ;;  %v938_v1 = vmax.f32 %v936_v50, %v937_v54  ;;  %v934_v3 = vrot.slane %v933_v48, 1  ;;  %v1157_v4 = vmax.f32 %v1155_v35, %v1156_v49 }
  0xdb   : > { %v1048_v5 = vsel %vm774_vm1, %v749_v56, -inf  ;;  %v1160_v7 = vsel %vm774_vm1, %v765_v57, -inf  ;;  %v823_v9 = vmax.f32 %v821_v38, %v822_v52  ;;  %v718_v6 = vmax.f32 %v654_v58, 0.0 }
  0xdc   : > { %v828_v10 = vmax.f32 %v826_v53, %v827_v0  ;;  %v939_v11 = vrot.slane %v938_v1, 2  ;;  %v1049_v12 = vrot.slane %v1048_v5, 4  ;;  %v1161_v62 = vrot.slane %v1160_v7, 4  ;;  %v573_v44 = vpop.f32.mrf.mxu2 }
  0xdd   : > { %v670_v13 = vadd.f32 %v1693_v2, %v522_v47  ;;  %v686_v14 = vadd.f32 %v1693_v2, %v570_v59  ;;  %v1046_v15 = vrot.slane %v1045_v63, 1  ;;  %v935_v19 = vmax.f32 %v933_v48, %v934_v3  ;;  %v621_v50 = vpop.f32.mrf.mxu3 }
  0xde   : > { %v829_v16 = vrot.slane %v828_v10, 1  ;;  %v940_v17 = vmax.f32 %v938_v1, %v939_v11  ;;  %v1050_v18 = vmax.f32 %v1048_v5, %v1049_v12  ;;  %v1158_v20 = vrot.slane %v1157_v4, 1  ;;  %v480_v5 = vpop.f32.mrf.mxu0 }
  0xdf   : > { %v1162_v21 = vmax.f32 %v1160_v7, %v1161_v62  ;;  %v702_v22 = vadd.f32 %v1693_v2, %v618_v8  ;;  %v734_v29 = vmax.f32 %v670_v13, 0.0  ;;  %v1298_v32 = vsel %vm1297_vm7, %v823_v9, %v1296_v28  ;;  %v528_v8 = vpop.f32.mrf.mxu1 }
  0xe0   : > { %v830_v24 = vmax.f32 %v828_v10, %v829_v16  ;;  %v941_v25 = vrot.slane %v940_v17, 1  ;;  %v1051_v26 = vrot.slane %v1050_v18, 2  ;;  %v831_v34 = vsel %vm774_vm1, %v718_v6, -inf }
  0xe1   : > { %v1163_v33 = vrot.slane %v1162_v21, 2  ;;  %v750_v35 = vmax.f32 %v686_v14, 0.0  ;;  %v766_v40 = vmax.f32 %v702_v22, 0.0  ;;  %v1326_v41 = vsel %vm1295_vm6, %v1040_v55, %v1787_v37 }
  0xe2   : > { %v1300_v61 = vsel %vm1299_vm8, %v830_v24, %v1298_v32  ;;  %v942_v31 = vmax.f32 %v940_v17, %v941_v25  ;;  %v1052_v38 = vmax.f32 %v1050_v18, %v1051_v26  ;;  %v1313_v42 = vsel %vm1297_vm7, %v935_v19, %v1794_v39 }
  0xe3   : > { %v1047_v43 = vmax.f32 %v1045_v63, %v1046_v15  ;;  %1358 = vst.msk [vmem:[%s1816_s29] sm:$0xff] %vm774_vm1, %v1300_v61  ;;  %v1164_v28 = vmax.f32 %v1162_v21, %v1163_v33  ;;  %v1159_v36 = vmax.f32 %v1157_v4, %v1158_v20  ;;  %v943_v47 = vsel %vm774_vm1, %v734_v29, -inf }
  0xe4   : > { %v1314_v45 = vsel %vm1299_vm8, %v942_v31, %v1313_v42  ;;  %v1053_v46 = vrot.slane %v1052_v38, 1  ;;  %v832_v49 = vrot.slane %v831_v34, 4  ;;  %v1055_v37 = vsel %vm774_vm1, %v750_v35, -inf  ;;  %v576_v17 = vpop.f32.mrf.mxu2 }
  0xe5   : > { %1360 = vst.msk [vmem:[%s1816_s29 + $0x10] sm:$0xff] %vm774_vm1, %v1314_v45  ;;  %v1165_v48 = vrot.slane %v1164_v28, 1  ;;  %v655_v39 = vadd.f32 %v1693_v2, %v477_v23  ;;  %v1340_v51 = vsel %vm1295_vm6, %v1152_v60, %v1790_v27  ;;  %v1167_v53 = vsel %vm774_vm1, %v766_v40, -inf  ;;  %v624_v24 = vpop.f32.mrf.mxu3 }
  0xe6   : > { %v1054_v52 = vmax.f32 %v1052_v38, %v1053_v46  ;;  %v671_v54 = vadd.f32 %v1693_v2, %v525_v30  ;;  %v1327_v55 = vsel %vm1297_vm7, %v1047_v43, %v1326_v41  ;;  %v944_v57 = vrot.slane %v943_v47, 4  ;;  %v483_v43 = vpop.f32.mrf.mxu0 }
  0xe7   : > { %v1166_v56 = vmax.f32 %v1164_v28, %v1165_v48  ;;  %v719_v58 = vmax.f32 %v655_v39, 0.0  ;;  %v1341_v59 = vsel %vm1297_vm7, %v1159_v36, %v1340_v51  ;;  %v1056_v0 = vrot.slane %v1055_v37, 4  ;;  %v531_v36 = vpop.f32.mrf.mxu1 }
  0xe8   : > { %v1328_v63 = vsel %vm1299_vm8, %v1054_v52, %v1327_v55  ;;  %v735_v1 = vmax.f32 %v671_v54, 0.0  ;;  %v833_v60 = vmax.f32 %v831_v34, %v832_v49  ;;  %v1168_v3 = vrot.slane %v1167_v53, 4 }
  0xe9   : > { %1362 = vst.msk [vmem:[%s1816_s29 + $0x20] sm:$0xff] %vm774_vm1, %v1328_v63  ;;  %v1342_v27 = vsel %vm1299_vm8, %v1166_v56, %v1341_v59  ;;  %v838_v4 = vsel %vm774_vm1, %v719_v58, -inf  ;;  %v687_v7 = vadd.f32 %v1693_v2, %v573_v44  ;;  %v945_v9 = vmax.f32 %v943_v47, %v944_v57 }
  0xea   : > { %1364 = vst.msk [vmem:[%s1816_s29 + $0x30] sm:$0xff] %vm774_vm1, %v1342_v27  ;;  %v839_v10 = vrot.slane %v838_v4, 4  ;;  %v950_v11 = vsel %vm774_vm1, %v735_v1, -inf  ;;  %v703_v12 = vadd.f32 %v1693_v2, %v621_v50  ;;  %v1057_v62 = vmax.f32 %v1055_v37, %v1056_v0 }
  0xeb   : > { %v751_v6 = vmax.f32 %v687_v7, 0.0  ;;  %v656_v13 = vadd.f32 %v1693_v2, %v480_v5  ;;  %v834_v14 = vrot.slane %v833_v60, 2  ;;  %v1169_v15 = vmax.f32 %v1167_v53, %v1168_v3 }
  0xec   : > { %v767_v16 = vmax.f32 %v703_v12, 0.0  ;;  %v951_v18 = vrot.slane %v950_v11, 4  ;;  %v946_v21 = vrot.slane %v945_v9, 2  ;;  %v840_v22 = vmax.f32 %v838_v4, %v839_v10  ;;  %v579_v54 = vpop.f32.mrf.mxu2 }
  0xed   : > { %v1062_v19 = vsel %vm774_vm1, %v751_v6, -inf  ;;  %v720_v20 = vmax.f32 %v656_v13, 0.0  ;;  %v672_v23 = vadd.f32 %v1693_v2, %v528_v8  ;;  %v1058_v25 = vrot.slane %v1057_v62, 2  ;;  %v627_v5 = vpop.f32.mrf.mxu3 }
  0xee   : > { %v1174_v26 = vsel %vm774_vm1, %v767_v16, -inf  ;;  %v688_v29 = vadd.f32 %v1693_v2, %v576_v17  ;;  %v835_v30 = vmax.f32 %v833_v60, %v834_v14  ;;  %v1170_v32 = vrot.slane %v1169_v15, 2  ;;  %v486_v17 = vpop.f32.mrf.mxu0 }
  0xef   : > { %v1063_v33 = vrot.slane %v1062_v19, 4  ;;  %v736_v34 = vmax.f32 %v672_v23, 0.0  ;;  %v952_v35 = vmax.f32 %v950_v11, %v951_v18  ;;  %v845_v61 = vsel %vm774_vm1, %v720_v20, -inf }
  0xf0   : > { %v752_v31 = vmax.f32 %v688_v29, 0.0  ;;  %v704_v38 = vadd.f32 %v1693_v2, %v624_v24  ;;  %v947_v40 = vmax.f32 %v945_v9, %v946_v21  ;;  %v841_v41 = vrot.slane %v840_v22, 2 }
  0xf1   : > { %v1175_v42 = vrot.slane %v1174_v26, 4  ;;  %v1059_v28 = vmax.f32 %v1057_v62, %v1058_v25  ;;  %v957_v44 = vsel %vm774_vm1, %v736_v34, -inf  ;;  %v836_v45 = vrot.slane %v835_v30, 1 }
  0xf2   : > { %v1064_v46 = vmax.f32 %v1062_v19, %v1063_v33  ;;  %v846_v47 = vrot.slane %v845_v61, 4  ;;  %v1069_v48 = vsel %vm774_vm1, %v752_v31, -inf  ;;  %v1171_v49 = vmax.f32 %v1169_v15, %v1170_v32 }
  0xf3   : > { %v953_v37 = vrot.slane %v952_v35, 2  ;;  %v768_v39 = vmax.f32 %v704_v38, 0.0  ;;  %v948_v50 = vrot.slane %v947_v40, 1  ;;  %v842_v51 = vmax.f32 %v840_v22, %v841_v41  ;;  %v534_v22 = vpop.f32.mrf.mxu1 }
  0xf4   : > { %v1176_v52 = vmax.f32 %v1174_v26, %v1175_v42  ;;  %v958_v53 = vrot.slane %v957_v44, 4  ;;  %v1060_v55 = vrot.slane %v1059_v28, 1  ;;  %v1070_v56 = vrot.slane %v1069_v48, 4  ;;  %v582_v38 = vpop.f32.mrf.mxu2 }
  0xf5   : > { %v1181_v57 = vsel %vm774_vm1, %v768_v39, -inf  ;;  %v657_v58 = vadd.f32 %v1693_v2, %v483_v43  ;;  %v837_v59 = vmax.f32 %v835_v30, %v836_v45  ;;  %v1065_v63 = vrot.slane %v1064_v46, 2  ;;  %v630_v39 = vpop.f32.mrf.mxu3 }
  0xf6   : > { %v847_v0 = vmax.f32 %v845_v61, %v846_v47  ;;  %v1182_v1 = vrot.slane %v1181_v57, 4  ;;  %v1172_v27 = vrot.slane %v1171_v49, 1  ;;  %v954_v60 = vmax.f32 %v952_v35, %v953_v37 }
  0xf7   : > { %v721_v3 = vmax.f32 %v657_v58, 0.0  ;;  %v673_v4 = vadd.f32 %v1693_v2, %v531_v36  ;;  %v1861_v7 = vmax.f32 %v947_v40, %v948_v50  ;;  %v843_v8 = vrot.slane %v842_v51, 1 }
  0xf8   : > { %v1177_v9 = vrot.slane %v1176_v52, 2  ;;  %v959_v10 = vmax.f32 %v957_v44, %v958_v53  ;;  %v1863_v11 = vmax.f32 %v1059_v28, %v1060_v55  ;;  %v1071_v12 = vmax.f32 %v1069_v48, %v1070_v56 }
  0xf9   : > { %v852_v62 = vsel %vm774_vm1, %v721_v3, -inf  ;;  %v737_v6 = vmax.f32 %v673_v4, 0.0  ;;  %v1066_v13 = vmax.f32 %v1064_v46, %v1065_v63  ;;  %v848_v14 = vrot.slane %v847_v0, 2  ;;  %v489_v4 = vpop.f32.mrf.mxu0 }
  0xfa   : > { %v1183_v15 = vmax.f32 %v1181_v57, %v1182_v1  ;;  %v853_v16 = vrot.slane %v852_v62, 4  ;;  %v955_v18 = vrot.slane %v954_v60, 1  ;;  %v689_v20 = vadd.f32 %v1693_v2, %v579_v54 }
  0xfb   : > { %v964_v19 = vsel %vm774_vm1, %v737_v6, -inf  ;;  %v705_v21 = vadd.f32 %v1693_v2, %v627_v5  ;;  %v844_v23 = vmax.f32 %v842_v51, %v843_v8  ;;  %v1178_v24 = vmax.f32 %v1176_v52, %v1177_v9 }
  0xfc   : > { %v960_v25 = vrot.slane %v959_v10, 2  ;;  %v965_v26 = vrot.slane %v964_v19, 4  ;;  %v1072_v29 = vrot.slane %v1071_v12, 2  ;;  %v753_v30 = vmax.f32 %v689_v20, 0.0 }
  0xfd   : > { %v769_v32 = vmax.f32 %v705_v21, 0.0  ;;  %v658_v33 = vadd.f32 %v1693_v2, %v486_v17  ;;  %v1067_v34 = vrot.slane %v1066_v13, 1  ;;  %v849_v35 = vmax.f32 %v847_v0, %v848_v14  ;;  %v585_v21 = vpop.f32.mrf.mxu2 }
  0xfe   : > { %v1184_v61 = vrot.slane %v1183_v15, 2  ;;  %v854_v31 = vmax.f32 %v852_v62, %v853_v16  ;;  %v1076_v40 = vsel %vm774_vm1, %v753_v30, -inf  ;;  %v674_v43 = vadd.f32 %v1693_v2, %v534_v22 }
  0xff   : > { %v1188_v41 = vsel %vm774_vm1, %v769_v32, -inf  ;;  %v722_v42 = vmax.f32 %v658_v33, 0.0  ;;  %v1173_v28 = vmax.f32 %v1171_v49, %v1172_v27  ;;  %v961_v44 = vmax.f32 %v959_v10, %v960_v25  ;;  %v633_v32 = vpop.f32.mrf.mxu3 }
 0x100   : > { %v966_v36 = vmax.f32 %v964_v19, %v965_v26  ;;  %v1077_v45 = vrot.slane %v1076_v40, 4  ;;  %v1073_v46 = vmax.f32 %v1071_v12, %v1072_v29  ;;  %v1189_v47 = vrot.slane %v1188_v41, 4 }
 0x101   : > { %v738_v48 = vmax.f32 %v674_v43, 0.0  ;;  %v690_v37 = vadd.f32 %v1693_v2, %v582_v38  ;;  %v956_v50 = vmax.f32 %v954_v60, %v955_v18  ;;  %v1179_v51 = vrot.slane %v1178_v24, 1  ;;  %v537_v60 = vpop.f32.mrf.mxu1 }
 0x102   : > { %v855_v52 = vrot.slane %v854_v31, 2  ;;  %v859_v53 = vsel %vm774_vm1, %v722_v42, -inf  ;;  %v1301_v54 = vsel %vm1287_vm2, %v844_v23, %v837_v59  ;;  %v1068_v55 = vmax.f32 %v1066_v13, %v1067_v34  ;;  %v1882_v59 = vld [vmem:[%s1970_s2] ss:$0 sm:$0xff] }
 0x103   : > { %v850_v56 = vrot.slane %v849_v35, 1  ;;  %v1185_v57 = vmax.f32 %v1183_v15, %v1184_v61  ;;  %v967_v49 = vrot.slane %v966_v36, 2  ;;  %v1078_v58 = vmax.f32 %v1076_v40, %v1077_v45 }
 0x104   : > { %v971_v63 = vsel %vm774_vm1, %v738_v48, -inf  ;;  %v754_v0 = vmax.f32 %v690_v37, 0.0  ;;  %v962_v1 = vrot.slane %v961_v44, 1  ;;  %v1074_v27 = vrot.slane %v1073_v46, 1  ;;  %v492_v48 = vpop.f32.mrf.mxu0 }
 0x105   : > { %v1190_v3 = vmax.f32 %v1188_v41, %v1189_v47  ;;  %v860_v2 = vrot.slane %v859_v53, 4  ;;  %v1315_v5 = vsel %vm1287_vm2, %v956_v50, %v1861_v7  ;;  %v1180_v8 = vmax.f32 %v1178_v24, %v1179_v51 }
 0x106   : > { %v856_v9 = vmax.f32 %v854_v31, %v855_v52  ;;  %v706_v10 = vadd.f32 %v1882_v59, %v630_v39  ;;  %v1329_v12 = vsel %vm1287_vm2, %v1068_v55, %v1863_v11  ;;  %v851_v62 = vmax.f32 %v849_v35, %v850_v56 }
 0x107   : > { %v1186_v6 = vrot.slane %v1185_v57, 1  ;;  %v972_v13 = vrot.slane %v971_v63, 4  ;;  %v968_v14 = vmax.f32 %v966_v36, %v967_v49  ;;  %v1079_v15 = vrot.slane %v1078_v58, 2 }
 0x108   : > { %v1083_v16 = vsel %vm774_vm1, %v754_v0, -inf  ;;  %v659_v7 = vadd.f32 %v1882_v59, %v489_v4  ;;  %v963_v17 = vmax.f32 %v961_v44, %v962_v1  ;;  %v1075_v18 = vmax.f32 %v1073_v46, %v1074_v27 }
 0x109   : > { %v1191_v19 = vrot.slane %v1190_v3, 2  ;;  %v861_v20 = vmax.f32 %v859_v53, %v860_v2  ;;  %v1343_v22 = vsel %vm1287_vm2, %v1180_v8, %v1173_v28  ;;  %v857_v23 = vrot.slane %v856_v9, 1  ;;  %v540_v37 = vpop.f32.mrf.mxu1  ;;  %v588_v2 = vpop.f32.mrf.mxu2 }
 0x10a   : > { %v770_v24 = vmax.f32 %v706_v10, 0.0  ;;  %v723_v25 = vmax.f32 %v659_v7, 0.0  ;;  %v1302_v11 = vsel %vm1289_vm3, %v851_v62, %v1301_v54  ;;  %v973_v26 = vmax.f32 %v971_v63, %v972_v13 }
 0x10b   : > { %v1084_v29 = vrot.slane %v1083_v16, 4  ;;  %v675_v30 = vadd.f32 %v1882_v59, %v537_v60  ;;  %v1187_v33 = vmax.f32 %v1185_v57, %v1186_v6  ;;  %v969_v34 = vrot.slane %v968_v14, 1  ;;  %v636_v6 = vpop.f32.mrf.mxu3 }
 0x10c   : > { %v1080_v35 = vmax.f32 %v1078_v58, %v1079_v15  ;;  %v866_v61 = vsel %vm774_vm1, %v723_v25, -inf  ;;  %v1316_v31 = vsel %vm1289_vm3, %v963_v17, %v1315_v5  ;;  %v1895_v38 = vsel %vm1289_vm3, %v1075_v18, %v1329_v12 }
 0x10d   : > { %v1192_v40 = vmax.f32 %v1190_v3, %v1191_v19  ;;  %v862_v41 = vrot.slane %v861_v20, 2  ;;  %v858_v42 = vmax.f32 %v856_v9, %v857_v23  ;;  %v1195_v43 = vsel %vm774_vm1, %v770_v24, -inf }
 0x10e   : > { %v739_v28 = vmax.f32 %v675_v30, 0.0  ;;  %v691_v44 = vadd.f32 %v1882_v59, %v585_v21  ;;  %v974_v36 = vrot.slane %v973_v26, 2  ;;  %v1085_v45 = vmax.f32 %v1083_v16, %v1084_v29  ;;  %v495_v29 = vpop.f32.mrf.mxu0 }
 0x10f   : > { %v867_v46 = vrot.slane %v866_v61, 4  ;;  %v707_v47 = vadd.f32 %v1882_v59, %v633_v32  ;;  %v1901_v39 = vsel %vm1289_vm3, %v1187_v33, %v1343_v22  ;;  %v970_v50 = vmax.f32 %v968_v14, %v969_v34 }
 0x110   : > { %v1081_v51 = vrot.slane %v1080_v35, 1  ;;  %v978_v52 = vsel %vm774_vm1, %v739_v28, -inf  ;;  %v1193_v53 = vrot.slane %v1192_v40, 1  ;;  %v863_v54 = vmax.f32 %v861_v20, %v862_v41 }
 0x111   : > { %v1196_v55 = vrot.slane %v1195_v43, 4  ;;  %v755_v56 = vmax.f32 %v691_v44, 0.0  ;;  %v1303_v57 = vsel %vm1291_vm4, %v858_v42, %v1302_v11  ;;  %v771_v49 = vmax.f32 %v707_v47, 0.0  ;;  %v543_v44 = vpop.f32.mrf.mxu1 }
 0x112   : > { %v660_v58 = vadd.f32 %v1882_v59, %v492_v48  ;;  %v676_v63 = vadd.f32 %v1882_v59, %v540_v37  ;;  %v975_v0 = vmax.f32 %v973_v26, %v974_v36  ;;  %v1086_v1 = vrot.slane %v1085_v45, 2 }
 0x113   : > { %v868_v27 = vmax.f32 %v866_v61, %v867_v46  ;;  %v979_v3 = vrot.slane %v978_v52, 4  ;;  %v1317_v4 = vsel %vm1291_vm4, %v970_v50, %v1316_v31  ;;  %v1908_v60 = vmax.f32 %v1080_v35, %v1081_v51 }
 0x114   : > { %v724_v5 = vmax.f32 %v660_v58, 0.0  ;;  %v740_v8 = vmax.f32 %v676_v63, 0.0  ;;  %v1910_v9 = vmax.f32 %v1192_v40, %v1193_v53  ;;  %v864_v10 = vrot.slane %v863_v54, 1 }
 0x115   : > { %v1197_v12 = vmax.f32 %v1195_v43, %v1196_v55  ;;  %v1090_v62 = vsel %vm774_vm1, %v755_v56, -inf  ;;  %v1202_v13 = vsel %vm774_vm1, %v771_v49, -inf  ;;  %v692_v16 = vadd.f32 %v1882_v59, %v588_v2  ;;  %v591_v56 = vpop.f32.mrf.mxu2 }
 0x116   : > { %v873_v14 = vsel %vm774_vm1, %v724_v5, -inf  ;;  %v985_v15 = vsel %vm774_vm1, %v740_v8, -inf  ;;  %v976_v7 = vrot.slane %v975_v0, 1  ;;  %v1087_v17 = vmax.f32 %v1085_v45, %v1086_v1 }
 0x117   : > { %v869_v18 = vrot.slane %v868_v27, 2  ;;  %v980_v19 = vmax.f32 %v978_v52, %v979_v3  ;;  %v874_v20 = vrot.slane %v873_v14, 4  ;;  %v986_v21 = vrot.slane %v985_v15, 4 }
 0x118   : > { %v756_v22 = vmax.f32 %v692_v16, 0.0  ;;  %v708_v23 = vadd.f32 %v1882_v59, %v636_v6  ;;  %v865_v24 = vmax.f32 %v863_v54, %v864_v10  ;;  %v1198_v25 = vrot.slane %v1197_v12, 2 }
 0x119   : > { %v1091_v11 = vrot.slane %v1090_v62, 4  ;;  %v1203_v26 = vrot.slane %v1202_v13, 4  ;;  %v875_v30 = vmax.f32 %v873_v14, %v874_v20  ;;  %v987_v32 = vmax.f32 %v985_v15, %v986_v21 }
 0x11a   : > { %v1097_v33 = vsel %vm774_vm1, %v756_v22, -inf  ;;  %v772_v34 = vmax.f32 %v708_v23, 0.0  ;;  %v977_v35 = vmax.f32 %v975_v0, %v976_v7  ;;  %v1088_v61 = vrot.slane %v1087_v17, 1  ;;  %v639_v0 = vpop.f32.mrf.mxu3 }
 0x11b   : > { %v870_v31 = vmax.f32 %v868_v27, %v869_v18  ;;  %v1098_v40 = vrot.slane %v1097_v33, 4  ;;  %v981_v41 = vrot.slane %v980_v19, 2  ;;  %v876_v42 = vrot.slane %v875_v30, 2 }
 0x11c   : > { %v1209_v43 = vsel %vm774_vm1, %v772_v34, -inf  ;;  %v661_v28 = vadd.f32 %v1882_v59, %v495_v29  ;;  %v1304_v36 = vsel %vm1293_vm5, %v865_v24, %v1303_v57  ;;  %v1922_v45 = vmax.f32 %v1197_v12, %v1198_v25 }
 0x11d   : > { %v1092_v46 = vmax.f32 %v1090_v62, %v1091_v11  ;;  %v1204_v47 = vmax.f32 %v1202_v13, %v1203_v26  ;;  %v988_v48 = vrot.slane %v987_v32, 2  ;;  %v1099_v37 = vmax.f32 %v1097_v33, %v1098_v40 }
 0x11e   : > { %v1210_v50 = vrot.slane %v1209_v43, 4  ;;  %v725_v51 = vmax.f32 %v661_v28, 0.0  ;;  %v1318_v52 = vsel %vm1293_vm5, %v977_v35, %v1317_v4  ;;  %v1925_v53 = vmax.f32 %v1087_v17, %v1088_v61 }
 0x11f   : > { %v871_v54 = vrot.slane %v870_v31, 1  ;;  %v677_v55 = vadd.f32 %v1882_v59, %v543_v44  ;;  %v982_v49 = vmax.f32 %v980_v19, %v981_v41  ;;  %v877_v58 = vmax.f32 %v875_v30, %v876_v42 }
 0x120   : > { %v1211_v63 = vmax.f32 %v1209_v43, %v1210_v50  ;;  %v880_v57 = vsel %vm774_vm1, %v725_v51, -inf  ;;  %v1200_v1 = vrot.slane %v1922_v45, 1  ;;  %v1093_v27 = vrot.slane %v1092_v46, 2 }
 0x121   : > { %v881_v3 = vrot.slane %v880_v57, 4  ;;  %v741_v2 = vmax.f32 %v677_v55, 0.0  ;;  %v1205_v5 = vrot.slane %v1204_v47, 2  ;;  %v989_v8 = vmax.f32 %v987_v32, %v988_v48 }
 0x122   : > { %v1100_v4 = vrot.slane %v1099_v37, 2  ;;  %v693_v10 = vadd.f32 %v1882_v59, %v591_v56  ;;  %v1212_v12 = vrot.slane %v1211_v63, 2  ;;  %v709_v13 = vadd.f32 %v1882_v59, %v639_v0 }
 0x123   : > { %v882_v62 = vmax.f32 %v880_v57, %v881_v3  ;;  %v992_v6 = vsel %vm774_vm1, %v741_v2, -inf  ;;  %v872_v14 = vmax.f32 %v870_v31, %v871_v54  ;;  %v983_v15 = vrot.slane %v982_v49, 1 }
 0x124   : > { %v878_v16 = vrot.slane %v877_v58, 1  ;;  %v993_v7 = vrot.slane %v992_v6, 4  ;;  %v1094_v17 = vmax.f32 %v1092_v46, %v1093_v27  ;;  %v757_v19 = vmax.f32 %v693_v10, 0.0 }
 0x125   : > { %v883_v18 = vrot.slane %v882_v62, 2  ;;  %v773_v20 = vmax.f32 %v709_v13, 0.0  ;;  %v1206_v21 = vmax.f32 %v1204_v47, %v1205_v5  ;;  %v990_v22 = vrot.slane %v989_v8, 1 }
 0x126   : > { %v1101_v23 = vmax.f32 %v1099_v37, %v1100_v4  ;;  %v994_v24 = vmax.f32 %v992_v6, %v993_v7  ;;  %v1213_v25 = vmax.f32 %v1211_v63, %v1212_v12  ;;  %v1104_v26 = vsel %vm774_vm1, %v757_v19, -inf }
 0x127   : > { %v884_v11 = vmax.f32 %v882_v62, %v883_v18  ;;  %v1216_v29 = vsel %vm774_vm1, %v773_v20, -inf  ;;  %v879_v30 = vmax.f32 %v877_v58, %v878_v16  ;;  %v1105_v32 = vrot.slane %v1104_v26, 4 }
 0x128   : > { %v995_v59 = vrot.slane %v994_v24, 2  ;;  %v1217_v33 = vrot.slane %v1216_v29, 4  ;;  %v1305_v34 = vsel %vm1295_vm6, %v872_v14, %v1304_v36  ;;  %v984_v35 = vmax.f32 %v982_v49, %v983_v15 }
 0x129   : > { %v1095_v61 = vrot.slane %v1094_v17, 1  ;;  %v885_v31 = vrot.slane %v884_v11, 1  ;;  %v1207_v40 = vrot.slane %v1206_v21, 1  ;;  %v1106_v42 = vmax.f32 %v1104_v26, %v1105_v32 }
 0x12a   : > { %v996_v41 = vmax.f32 %v994_v24, %v995_v59  ;;  %v1218_v43 = vmax.f32 %v1216_v29, %v1217_v33  ;;  %v991_v28 = vmax.f32 %v989_v8, %v990_v22  ;;  %v1102_v44 = vrot.slane %v1101_v23, 1 }
 0x12b   : > { %v1214_v46 = vrot.slane %v1213_v25, 1  ;;  %v886_v47 = vmax.f32 %v884_v11, %v885_v31  ;;  %v1306_v48 = vsel %vm1297_vm7, %v879_v30, %v1305_v34  ;;  %v1107_v50 = vrot.slane %v1106_v42, 2 }
 0x12c   : > { %v997_v37 = vrot.slane %v996_v41, 1  ;;  %v1219_v51 = vrot.slane %v1218_v43, 2  ;;  %v1201_v54 = vmax.f32 %v1922_v45, %v1200_v1  ;;  %v1319_v36 = vsel %vm1295_vm6, %v984_v35, %v1318_v52 }
 0x12d   : > { %v1096_v55 = vmax.f32 %v1094_v17, %v1095_v61  ;;  %v1307_v56 = vsel %vm1299_vm8, %v886_v47, %v1306_v48  ;;  %v1208_v49 = vmax.f32 %v1206_v21, %v1207_v40  ;;  %v1108_v63 = vmax.f32 %v1106_v42, %v1107_v50 }
 0x12e   : > { %1359 = vst.msk [vmem:[%s1816_s29 + $0x8] sm:$0xff] %vm774_vm1, %v1307_v56  ;;  %v998_v58 = vmax.f32 %v996_v41, %v997_v37  ;;  %v1220_v57 = vmax.f32 %v1218_v43, %v1219_v51  ;;  %v1331_v0 = vsel %vm1291_vm4, %v1908_v60, %v1895_v38  ;;  %v1320_v27 = vsel %vm1297_vm7, %v991_v28, %v1319_v36 }
 0x12f   : > { %v1103_v3 = vmax.f32 %v1101_v23, %v1102_v44  ;;  %v1215_v45 = vmax.f32 %v1213_v25, %v1214_v46  ;;  %v1345_v52 = vsel %vm1291_vm4, %v1910_v9, %v1901_v39  ;;  %v1109_v2 = vrot.slane %v1108_v63, 1 }
 0x130   : > { %v1321_v1 = vsel %vm1299_vm8, %v998_v58, %v1320_v27  ;;  %v1221_v5 = vrot.slane %v1220_v57, 1  ;;  %v1332_v8 = vsel %vm1293_vm5, %v1925_v53, %v1331_v0  ;;  %v1346_v4 = vsel %vm1293_vm5, %v1201_v54, %v1345_v52 }
 0x131   : > { %1361 = vst.msk [vmem:[%s1816_s29 + $0x18] sm:$0xff] %vm774_vm1, %v1321_v1  ;;  %v1333_v38 = vsel %vm1295_vm6, %v1096_v55, %v1332_v8  ;;  %v1347_v60 = vsel %vm1295_vm6, %v1208_v49, %v1346_v4  ;;  %v1110_v10 = vmax.f32 %v1108_v63, %v1109_v2 }
 0x132   : > { %v1222_v12 = vmax.f32 %v1220_v57, %v1221_v5  ;;  %v1334_v39 = vsel %vm1297_vm7, %v1103_v3, %v1333_v38  ;;  %v1348_v9 = vsel %vm1297_vm7, %v1215_v45, %v1347_v60 }
 0x133   : > { %v1335_v62 = vsel %vm1299_vm8, %v1110_v10, %v1334_v39 }
 0x134   : > { %v1349_v6 = vsel %vm1299_vm8, %v1222_v12, %v1348_v9  ;;  %1363 = vst.msk [vmem:[%s1816_s29 + $0x28] sm:$0xff] %vm774_vm1, %v1335_v62 }
 0x135   : > { %1365 = vst.msk [vmem:[%s1816_s29 + $0x38] sm:$0xff] %vm774_vm1, %v1349_v6 }
 0x136 PF: > { %s13_s12 = sadd.s32 1, %s1519_s12  }
 0x137   : > { %p10_p5 = scmp.ge.s32.totalorder %s13_s12, 4  }
 0x139   :  { %12 = sbr.rel (!%p10_p5) target bundleno = 1 (0x1), region = 62 }

</bundles_post_ra>
